<compile_context>
chip_gen: v7x
topology: tpu7x:2x2x1
jax: 0.10.0
libtpu: 0.0.40
codegen_flags: <defaults>
</compile_context>

<pallas_src>
import functools

import numpy as np
import jax
import jax.numpy as jnp
from jax import lax
from jax.experimental import pallas as pl
from jax.experimental.pallas import tpu as pltpu


def _tv4d_kernel(lut_ref, code_ref, out_ref, xp_ref, *, dim, d3p):
    d = dim
    d3 = d ** 3

    # Align the (6, d^3) LUT into an (8, d3p) zero-filled VMEM scratch.
    # Zero fill guarantees every padding lane / row is finite (0), so the
    # multiplicative masks below are safe (no 0*NaN).
    xp_ref[...] = jnp.zeros((8, d3p), jnp.float32)
    xp_ref[:6, :d3] = lut_ref[...]
    x = xp_ref[...]                                    # (8, d3p) f32

    code = code_ref[...]                               # (1, d3p) int32
    # Combined TV weights in {0,1,2}; 0 on the last slice of each axis and on padding.
    wr = (code & 3).astype(jnp.float32)
    wg = ((code >> 2) & 3).astype(jnp.float32)
    wb = ((code >> 4) & 3).astype(jnp.float32)

    # ---- axis r (stride 1) ----
    xs = pltpu.roll(x, shift=d3p - 1, axis=1)          # xs[i] = x[i + 1]
    dd = x - xs
    acc_tv = wr * (dd * dd)
    acc_mn = jnp.minimum(wr, 1.0) * jnp.maximum(dd, 0.0)

    # ---- axis g (stride d) ----
    xs = pltpu.roll(x, shift=d3p - d, axis=1)
    dd = x - xs
    acc_tv = acc_tv + wg * (dd * dd)
    acc_mn = acc_mn + jnp.minimum(wg, 1.0) * jnp.maximum(dd, 0.0)

    # ---- axis b (stride d*d) ----
    xs = pltpu.roll(x, shift=d3p - d * d, axis=1)
    dd = x - xs
    acc_tv = acc_tv + wb * (dd * dd)
    acc_mn = acc_mn + jnp.minimum(wb, 1.0) * jnp.maximum(dd, 0.0)

    # ---- context term: sublane rows are (channel, context) pairs (0-1, 2-3, 4-5).
    # One sublane roll + even-row select, folded into acc_mn with the
    # mean-normalization ratio so a single cross-lane reduction covers it.
    inv_n1 = 1.0 / float(6 * d * d * (d - 1))          # elements per spatial dif mean
    inv_nc = 1.0 / float(3 * d * d * d)                # elements in the context mean
    ratio = inv_nc / inv_n1                            # = 2 * (d - 1) / d

    xc = pltpu.roll(x, shift=7, axis=0)                # xc[row] = x[(row + 1) mod 8]
    dc = jnp.maximum(x - xc, 0.0)
    row = lax.broadcasted_iota(jnp.int32, (8, d3p), 0)
    keep = jnp.logical_and(row < 6, (row & 1) == 0)    # rows 0, 2, 4 only
    acc_mn = acc_mn + jnp.where(keep, dc * ratio, 0.0)

    out_ref[0, 0] = jnp.sum(acc_tv) * inv_n1
    out_ref[0, 1] = jnp.sum(acc_mn) * inv_n1


@functools.lru_cache(maxsize=None)
def _make_code(dim: int, padded: int):
    """Packed int32 per-lane TV weights for the flat (b,g,r) -> b*d^2+g*d+r layout.

    bits 0-1: w_r, bits 2-3: w_g, bits 4-5: w_b; each in {0,1,2}.  Weights are 0
    on the last slice of the corresponding axis and on padding lanes (>= d^3).
    """
    d = dim
    flat = np.arange(padded, dtype=np.int64)
    r = flat % d
    g = (flat // d) % d
    b = flat // (d * d)
    valid = flat < d ** 3

    def w(coord):
        interior = valid & (coord < d - 1)
        edge = interior & ((coord == 0) | (coord == d - 2))
        return interior.astype(np.int32) + edge.astype(np.int32)   # 0, 1 or 2

    code = w(r) | (w(g) << 2) | (w(b) << 4)
    return code.reshape(1, padded).astype(np.int32)


@functools.partial(jax.jit, static_argnames="dim")
def tv_4d(lut_en: jax.Array, dim: int):
    """Forward pass of TV_4D. lut_en: (3, 2, dim, dim, dim) float32 -> (tv, mn)."""
    d = dim
    d3 = d ** 3
    d3p = ((d3 + 127) // 128) * 128          # lane-aligned working width (in-kernel)
    x = lut_en.reshape(3 * 2, d3)            # free contiguous reshape, NO pad
    code = jnp.asarray(_make_code(d, d3p))

    vmem = pltpu.MemorySpace.VMEM
    smem = pltpu.MemorySpace.SMEM
    out = pl.pallas_call(
        functools.partial(_tv4d_kernel, dim=d, d3p=d3p),
        out_shape=jax.ShapeDtypeStruct((1, 2), jnp.float32),
        in_specs=[pl.BlockSpec(memory_space=vmem),
                  pl.BlockSpec(memory_space=vmem)],
        out_specs=pl.BlockSpec(memory_space=smem),
        scratch_shapes=[pltpu.VMEM((8, d3p), jnp.float32)],
    )(x, code)
    return out[0, 0], out[0, 1]


def tv_4d_reference(lut_en: jax.Array, dim: int):
    """Pure-JAX reference of the PyTorch forward (weights built like the module)."""
    d = dim
    edge = jnp.array([0, d - 2], dtype=jnp.int32)
    wr = jnp.ones((3, 2, d, d, d - 1), jnp.float32).at[:, :, :, :, edge].multiply(2.0)
    wg = jnp.ones((3, 2, d, d - 1, d), jnp.float32).at[:, :, :, edge, :].multiply(2.0)
    wb = jnp.ones((3, 2, d - 1, d, d), jnp.float32).at[:, :, edge, :, :].multiply(2.0)
    dif_c = lut_en[:, :-1] - lut_en[:, 1:]
    dif_r = lut_en[..., :-1] - lut_en[..., 1:]
    dif_g = lut_en[:, :, :, :-1, :] - lut_en[:, :, :, 1:, :]
    dif_b = lut_en[:, :, :-1, :, :] - lut_en[:, :, 1:, :, :]
    tv = (jnp.mean(dif_r ** 2 * wr) + jnp.mean(dif_g ** 2 * wg)
          + jnp.mean(dif_b ** 2 * wb))
    mn = (jnp.mean(jax.nn.relu(dif_r)) + jnp.mean(jax.nn.relu(dif_g))
          + jnp.mean(jax.nn.relu(dif_b)) + jnp.mean(jax.nn.relu(dif_c)))
    return tv, mn


if __name__ == "__main__":
    dim = 17  # module default
    key = jax.random.PRNGKey(0)
    lut_en = jax.random.normal(key, (3, 2, dim, dim, dim), dtype=jnp.float32)

    tv, mn = tv_4d(lut_en, dim)
    tv, mn = jax.block_until_ready((tv, mn))

    tv_ref, mn_ref = tv_4d_reference(lut_en, dim)
    assert jnp.allclose(tv, tv_ref, rtol=2e-4, atol=1e-5), (tv, tv_ref)
    assert jnp.allclose(mn, mn_ref, rtol=2e-4, atol=1e-5), (mn, mn_ref)

    print("KERNEL_OK")
</pallas_src>

<mosaic_0001>
module attributes {stable_mosaic.version = 11 : i64} {
  func.func @_tv4d_kernel(%arg0: memref<6x4913xf32, #tpu.memory_space<vmem>>, %arg1: memref<1x4992xi32, #tpu.memory_space<vmem>>, %arg2: memref<1x2xf32, #tpu.memory_space<smem>>, %arg3: memref<8x4992xf32, #tpu.memory_space<vmem>>) attributes {dimension_semantics = [], scalar_prefetch = 0 : i64, scratch_operands = 1 : i64, tpu.core_type = #tpu.core_type<tc>} {
    %cst = arith.constant 0.000000e+00 : f32
    %0 = vector.broadcast %cst : f32 to vector<8x4992xf32>
    %c0 = arith.constant 0 : index
    %c0_0 = arith.constant 0 : index
    %1 = vector.load %arg3[%c0, %c0_0] : memref<8x4992xf32, #tpu.memory_space<vmem>>, vector<8x4992xf32>
    tpu.vector_store %arg3[%c0, %c0_0], %0 {strides = array<i32>} : memref<8x4992xf32, #tpu.memory_space<vmem>>, vector<8x4992xf32>,
    %c0_1 = arith.constant 0 : index
    %c0_2 = arith.constant 0 : index
    %2 = vector.load %arg0[%c0_1, %c0_2] : memref<6x4913xf32, #tpu.memory_space<vmem>>, vector<6x4913xf32>
    %c0_3 = arith.constant 0 : index
    %c0_4 = arith.constant 0 : index
    %3 = vector.load %arg3[%c0_3, %c0_4] : memref<8x4992xf32, #tpu.memory_space<vmem>>, vector<6x4913xf32>
    tpu.vector_store %arg3[%c0_3, %c0_4], %2 {strides = array<i32>} : memref<8x4992xf32, #tpu.memory_space<vmem>>, vector<6x4913xf32>,
    %c0_5 = arith.constant 0 : index
    %c0_6 = arith.constant 0 : index
    %4 = vector.load %arg3[%c0_5, %c0_6] : memref<8x4992xf32, #tpu.memory_space<vmem>>, vector<8x4992xf32>
    %c0_7 = arith.constant 0 : index
    %c0_8 = arith.constant 0 : index
    %5 = vector.load %arg1[%c0_7, %c0_8] : memref<1x4992xi32, #tpu.memory_space<vmem>>, vector<1x4992xi32>
    %c3_i32 = arith.constant 3 : i32
    %6 = vector.broadcast %c3_i32 : i32 to vector<1x4992xi32>
    %7 = arith.andi %5, %6 : vector<1x4992xi32>
    %8 = arith.sitofp %7 : vector<1x4992xi32> to vector<1x4992xf32>
    %c2_i32 = arith.constant 2 : i32
    %9 = vector.broadcast %c2_i32 : i32 to vector<1x4992xi32>
    %10 = arith.shrsi %5, %9 : vector<1x4992xi32>
    %c3_i32_9 = arith.constant 3 : i32
    %11 = vector.broadcast %c3_i32_9 : i32 to vector<1x4992xi32>
    %12 = arith.andi %10, %11 : vector<1x4992xi32>
    %13 = arith.sitofp %12 : vector<1x4992xi32> to vector<1x4992xf32>
    %c4_i32 = arith.constant 4 : i32
    %14 = vector.broadcast %c4_i32 : i32 to vector<1x4992xi32>
    %15 = arith.shrsi %5, %14 : vector<1x4992xi32>
    %c3_i32_10 = arith.constant 3 : i32
    %16 = vector.broadcast %c3_i32_10 : i32 to vector<1x4992xi32>
    %17 = arith.andi %15, %16 : vector<1x4992xi32>
    %18 = arith.sitofp %17 : vector<1x4992xi32> to vector<1x4992xf32>
    %c4991_i32 = arith.constant 4991 : i32
    %19 = tpu.dynamic_rotate %4 by %c4991_i32 dim 1 : vector<8x4992xf32>, i32 -> vector<8x4992xf32>
    %20 = arith.subf %4, %19 : vector<8x4992xf32>
    %21 = arith.mulf %20, %20 : vector<8x4992xf32>
    %22 = vector.broadcast %8 : vector<1x4992xf32> to vector<8x4992xf32>
    %23 = arith.mulf %22, %21 : vector<8x4992xf32>
    %cst_11 = arith.constant 1.000000e+00 : f32
    %24 = vector.broadcast %cst_11 : f32 to vector<1x4992xf32>
    %25 = arith.minimumf %8, %24 : vector<1x4992xf32>
    %cst_12 = arith.constant 0.000000e+00 : f32
    %26 = vector.broadcast %cst_12 : f32 to vector<8x4992xf32>
    %27 = arith.maximumf %20, %26 : vector<8x4992xf32>
    %28 = vector.broadcast %25 : vector<1x4992xf32> to vector<8x4992xf32>
    %29 = arith.mulf %28, %27 : vector<8x4992xf32>
    %c4975_i32 = arith.constant 4975 : i32
    %30 = tpu.dynamic_rotate %4 by %c4975_i32 dim 1 : vector<8x4992xf32>, i32 -> vector<8x4992xf32>
    %31 = arith.subf %4, %30 : vector<8x4992xf32>
    %32 = arith.mulf %31, %31 : vector<8x4992xf32>
    %33 = vector.broadcast %13 : vector<1x4992xf32> to vector<8x4992xf32>
    %34 = arith.mulf %33, %32 : vector<8x4992xf32>
    %35 = arith.addf %23, %34 : vector<8x4992xf32>
    %cst_13 = arith.constant 1.000000e+00 : f32
    %36 = vector.broadcast %cst_13 : f32 to vector<1x4992xf32>
    %37 = arith.minimumf %13, %36 : vector<1x4992xf32>
    %cst_14 = arith.constant 0.000000e+00 : f32
    %38 = vector.broadcast %cst_14 : f32 to vector<8x4992xf32>
    %39 = arith.maximumf %31, %38 : vector<8x4992xf32>
    %40 = vector.broadcast %37 : vector<1x4992xf32> to vector<8x4992xf32>
    %41 = arith.mulf %40, %39 : vector<8x4992xf32>
    %42 = arith.addf %29, %41 : vector<8x4992xf32>
    %c4703_i32 = arith.constant 4703 : i32
    %43 = tpu.dynamic_rotate %4 by %c4703_i32 dim 1 : vector<8x4992xf32>, i32 -> vector<8x4992xf32>
    %44 = arith.subf %4, %43 : vector<8x4992xf32>
    %45 = arith.mulf %44, %44 : vector<8x4992xf32>
    %46 = vector.broadcast %18 : vector<1x4992xf32> to vector<8x4992xf32>
    %47 = arith.mulf %46, %45 : vector<8x4992xf32>
    %48 = arith.addf %35, %47 : vector<8x4992xf32>
    %cst_15 = arith.constant 1.000000e+00 : f32
    %49 = vector.broadcast %cst_15 : f32 to vector<1x4992xf32>
    %50 = arith.minimumf %18, %49 : vector<1x4992xf32>
    %cst_16 = arith.constant 0.000000e+00 : f32
    %51 = vector.broadcast %cst_16 : f32 to vector<8x4992xf32>
    %52 = arith.maximumf %44, %51 : vector<8x4992xf32>
    %53 = vector.broadcast %50 : vector<1x4992xf32> to vector<8x4992xf32>
    %54 = arith.mulf %53, %52 : vector<8x4992xf32>
    %55 = arith.addf %42, %54 : vector<8x4992xf32>
    %c7_i32 = arith.constant 7 : i32
    %56 = tpu.dynamic_rotate %4 by %c7_i32 dim 0 : vector<8x4992xf32>, i32 -> vector<8x4992xf32>
    %57 = arith.subf %4, %56 : vector<8x4992xf32>
    %cst_17 = arith.constant 0.000000e+00 : f32
    %58 = vector.broadcast %cst_17 : f32 to vector<8x4992xf32>
    %59 = arith.maximumf %57, %58 : vector<8x4992xf32>
    %60 = tpu.iota {dimensions = array<i32: 0>} : vector<8x4992xi32>
    %c6_i32 = arith.constant 6 : i32
    %61 = vector.broadcast %c6_i32 : i32 to vector<8x4992xi32>
    %62 = arith.cmpi slt, %60, %61 : vector<8x4992xi32>
    %c1_i32 = arith.constant 1 : i32
    %63 = vector.broadcast %c1_i32 : i32 to vector<8x4992xi32>
    %64 = arith.andi %60, %63 : vector<8x4992xi32>
    %c0_i32 = arith.constant 0 : i32
    %65 = vector.broadcast %c0_i32 : i32 to vector<8x4992xi32>
    %66 = arith.cmpi eq, %64, %65 : vector<8x4992xi32>
    %67 = arith.andi %62, %66 : vector<8x4992xi1>
    %cst_18 = arith.constant 1.88235295 : f32
    %68 = vector.broadcast %cst_18 : f32 to vector<8x4992xf32>
    %69 = arith.mulf %59, %68 : vector<8x4992xf32>
    %cst_19 = arith.constant 0.000000e+00 : f32
    %70 = vector.broadcast %cst_19 : f32 to vector<8x4992xf32>
    %71 = arith.select %67, %69, %70 : vector<8x4992xi1>, vector<8x4992xf32>
    %72 = arith.addf %55, %71 : vector<8x4992xf32>
    %73 = vector.shape_cast %48 : vector<8x4992xf32> to vector<1x8x4992xf32>
    %cst_20 = arith.constant dense<0.000000e+00> : vector<1xf32>
    %74 = vector.multi_reduction <add>, %73, %cst_20 [1, 2] : vector<1x8x4992xf32> to vector<1xf32>
    %75 = vector.shape_cast %74 : vector<1xf32> to vector<1x1x1xf32>
    %76 = vector.extract %75[0, 0, 0] : f32 from vector<1x1x1xf32>
    %cst_21 = arith.constant 3.6043828E-5 : f32
    %77 = arith.mulf %76, %cst_21 : f32
    %c0_22 = arith.constant 0 : index
    %c0_23 = arith.constant 0 : index
    %78 = memref.load %arg2[%c0_22, %c0_23] : memref<1x2xf32, #tpu.memory_space<smem>>
    memref.store %77, %arg2[%c0_22, %c0_23] : memref<1x2xf32, #tpu.memory_space<smem>>
    %79 = vector.shape_cast %72 : vector<8x4992xf32> to vector<1x8x4992xf32>
    %cst_24 = arith.constant dense<0.000000e+00> : vector<1xf32>
    %80 = vector.multi_reduction <add>, %79, %cst_24 [1, 2] : vector<1x8x4992xf32> to vector<1xf32>
    %81 = vector.shape_cast %80 : vector<1xf32> to vector<1x1x1xf32>
    %82 = vector.extract %81[0, 0, 0] : f32 from vector<1x1x1xf32>
    %cst_25 = arith.constant 3.6043828E-5 : f32
    %83 = arith.mulf %82, %cst_25 : f32
    %c0_26 = arith.constant 0 : index
    %c1 = arith.constant 1 : index
    %84 = memref.load %arg2[%c0_26, %c1] : memref<1x2xf32, #tpu.memory_space<smem>>
    memref.store %83, %arg2[%c0_26, %c1] : memref<1x2xf32, #tpu.memory_space<smem>>
    return
  }
}

</mosaic_0001>

<bundles_post_ra>
// kernel: tv_4d.1
= control target key start
LH: loop header
LB: loop body
LE: loop exit
PB: predicated region body
PF: predicated region fallthrough
CT: control target
= control target key end

     0   :  { %v2942_v2 = vmov 0.0   ;;  %s2943_s25 = smov 127   ;;  %s2944_s26 = smov 111   ;;  %s5208_s0 = inlined_call_operand.vmem [shape: f32[6,4913], index: 0, kind: input, shape index: {}]   ;;  %s5209_s1 = inlined_call_operand.vmem [shape: s32[1,4992], index: 1, kind: input, shape index: {}]   ;;  %s5210_s2 = inlined_call_operand.vmem [shape: f32[1,2], index: 2, kind: output, shape index: {}]  }
   0x1   :  { %v53_v0 = vld [vmem:[%s5208_s0 + $0x10] sm:$0x3f]  ;;  %v51_v1 = vld [vmem:[%s5208_s0] sm:$0x3f]  ;;  %14 = vst [vmem:[#allocation2 + $0x10] sm:$0xff] %v2942_v2  ;;  %12 = vst [vmem:[#allocation2] sm:$0xff] %v2942_v2 }
   0x2   :  { %13 = vst [vmem:[#allocation2 + $0x8] sm:$0xff] %v2942_v2  ;;  %15 = vst [vmem:[#allocation2 + $0x18] sm:$0xff] %v2942_v2  ;;  %v52_v3 = vld [vmem:[%s5208_s0 + $0x8] sm:$0x3f]  ;;  %v54_v4 = vld [vmem:[%s5208_s0 + $0x18] sm:$0x3f] }
   0x3   :  { %16 = vst [vmem:[#allocation2 + $0x20] sm:$0xff] %v2942_v2  ;;  %17 = vst [vmem:[#allocation2 + $0x28] sm:$0xff] %v2942_v2  ;;  %v55_v5 = vld [vmem:[%s5208_s0 + $0x20] sm:$0x3f]  ;;  %v56_v6 = vld [vmem:[%s5208_s0 + $0x28] sm:$0x3f] }
   0x4   :  { %18 = vst [vmem:[#allocation2 + $0x30] sm:$0xff] %v2942_v2  ;;  %19 = vst [vmem:[#allocation2 + $0x38] sm:$0xff] %v2942_v2  ;;  %v57_v7 = vld [vmem:[%s5208_s0 + $0x30] sm:$0x3f]  ;;  %v58_v8 = vld [vmem:[%s5208_s0 + $0x38] sm:$0x3f] }
   0x5   :  { %20 = vst [vmem:[#allocation2 + $0x40] sm:$0xff] %v2942_v2  ;;  %21 = vst [vmem:[#allocation2 + $0x48] sm:$0xff] %v2942_v2  ;;  %v59_v9 = vld [vmem:[%s5208_s0 + $0x40] sm:$0x3f]  ;;  %v60_v10 = vld [vmem:[%s5208_s0 + $0x48] sm:$0x3f] }
   0x6   :  { %22 = vst [vmem:[#allocation2 + $0x50] sm:$0xff] %v2942_v2  ;;  %23 = vst [vmem:[#allocation2 + $0x58] sm:$0xff] %v2942_v2  ;;  %v61_v11 = vld [vmem:[%s5208_s0 + $0x50] sm:$0x3f]  ;;  %v62_v12 = vld [vmem:[%s5208_s0 + $0x58] sm:$0x3f] }
   0x7   :  { %24 = vst [vmem:[#allocation2 + $0x60] sm:$0xff] %v2942_v2  ;;  %25 = vst [vmem:[#allocation2 + $0x68] sm:$0xff] %v2942_v2  ;;  %v63_v13 = vld [vmem:[%s5208_s0 + $0x60] sm:$0x3f]  ;;  %v64_v14 = vld [vmem:[%s5208_s0 + $0x68] sm:$0x3f] }
   0x8   :  { %26 = vst [vmem:[#allocation2 + $0x70] sm:$0xff] %v2942_v2  ;;  %27 = vst [vmem:[#allocation2 + $0x78] sm:$0xff] %v2942_v2  ;;  %v65_v15 = vld [vmem:[%s5208_s0 + $0x70] sm:$0x3f]  ;;  %v66_v16 = vld [vmem:[%s5208_s0 + $0x78] sm:$0x3f] }
   0x9   :  { %28 = vst [vmem:[#allocation2 + $0x80] sm:$0xff] %v2942_v2  ;;  %29 = vst [vmem:[#allocation2 + $0x88] sm:$0xff] %v2942_v2  ;;  %v67_v17 = vld [vmem:[%s5208_s0 + $0x80] sm:$0x3f]  ;;  %v68_v18 = vld [vmem:[%s5208_s0 + $0x88] sm:$0x3f] }
   0xa   :  { %30 = vst [vmem:[#allocation2 + $0x90] sm:$0xff] %v2942_v2  ;;  %31 = vst [vmem:[#allocation2 + $0x98] sm:$0xff] %v2942_v2  ;;  %v69_v19 = vld [vmem:[%s5208_s0 + $0x90] sm:$0x3f]  ;;  %v70_v20 = vld [vmem:[%s5208_s0 + $0x98] sm:$0x3f] }
   0xb   :  { %32 = vst [vmem:[#allocation2 + $0xa0] sm:$0xff] %v2942_v2  ;;  %33 = vst [vmem:[#allocation2 + $0xa8] sm:$0xff] %v2942_v2  ;;  %v71_v21 = vld [vmem:[%s5208_s0 + $0xa0] sm:$0x3f]  ;;  %v72_v22 = vld [vmem:[%s5208_s0 + $0xa8] sm:$0x3f] }
   0xc   :  { %34 = vst [vmem:[#allocation2 + $0xb0] sm:$0xff] %v2942_v2  ;;  %35 = vst [vmem:[#allocation2 + $0xb8] sm:$0xff] %v2942_v2  ;;  %v73_v26 = vld [vmem:[%s5208_s0 + $0xb0] sm:$0x3f]  ;;  %v74_v27 = vld [vmem:[%s5208_s0 + $0xb8] sm:$0x3f] }
   0xd   :  { %36 = vst [vmem:[#allocation2 + $0xc0] sm:$0xff] %v2942_v2  ;;  %37 = vst [vmem:[#allocation2 + $0xc8] sm:$0xff] %v2942_v2  ;;  %v75_v28 = vld [vmem:[%s5208_s0 + $0xc0] sm:$0x3f] }
   0xe   :  { %38 = vst [vmem:[#allocation2 + $0xd0] sm:$0xff] %v2942_v2  ;;  %39 = vst [vmem:[#allocation2 + $0xd8] sm:$0xff] %v2942_v2 }
   0xf   :  { %40 = vst [vmem:[#allocation2 + $0xe0] sm:$0xff] %v2942_v2  ;;  %41 = vst [vmem:[#allocation2 + $0xe8] sm:$0xff] %v2942_v2 }
  0x10   :  { %42 = vst [vmem:[#allocation2 + $0xf0] sm:$0xff] %v2942_v2  ;;  %43 = vst [vmem:[#allocation2 + $0xf8] sm:$0xff] %v2942_v2 }
  0x11   :  { %44 = vst [vmem:[#allocation2 + $0x100] sm:$0xff] %v2942_v2  ;;  %45 = vst [vmem:[#allocation2 + $0x108] sm:$0xff] %v2942_v2 }
  0x12   :  { %46 = vst [vmem:[#allocation2 + $0x110] sm:$0xff] %v2942_v2  ;;  %47 = vst [vmem:[#allocation2 + $0x118] sm:$0xff] %v2942_v2 }
  0x13   :  { %48 = vst [vmem:[#allocation2 + $0x120] sm:$0xff] %v2942_v2  ;;  %49 = vst [vmem:[#allocation2 + $0x128] sm:$0xff] %v2942_v2 }
  0x14   :  { %50 = vst [vmem:[#allocation2 + $0x130] sm:$0xff] %v2942_v2  ;;  %92 = vst [vmem:[#allocation2 + $0x10] sm:$0x3f] %v53_v0 }
  0x15   :  { %90 = vst [vmem:[#allocation2] sm:$0x3f] %v51_v1  ;;  %91 = vst [vmem:[#allocation2 + $0x8] sm:$0x3f] %v52_v3 }
  0x16   :  { %93 = vst [vmem:[#allocation2 + $0x18] sm:$0x3f] %v54_v4  ;;  %94 = vst [vmem:[#allocation2 + $0x20] sm:$0x3f] %v55_v5 }
  0x17   :  { %95 = vst [vmem:[#allocation2 + $0x28] sm:$0x3f] %v56_v6  ;;  %96 = vst [vmem:[#allocation2 + $0x30] sm:$0x3f] %v57_v7 }
  0x18   :  { %97 = vst [vmem:[#allocation2 + $0x38] sm:$0x3f] %v58_v8  ;;  %98 = vst [vmem:[#allocation2 + $0x40] sm:$0x3f] %v59_v9 }
  0x19   :  { %99 = vst [vmem:[#allocation2 + $0x48] sm:$0x3f] %v60_v10  ;;  %100 = vst [vmem:[#allocation2 + $0x50] sm:$0x3f] %v61_v11 }
  0x1a   :  { %101 = vst [vmem:[#allocation2 + $0x58] sm:$0x3f] %v62_v12  ;;  %102 = vst [vmem:[#allocation2 + $0x60] sm:$0x3f] %v63_v13 }
  0x1b   :  { %103 = vst [vmem:[#allocation2 + $0x68] sm:$0x3f] %v64_v14  ;;  %104 = vst [vmem:[#allocation2 + $0x70] sm:$0x3f] %v65_v15  ;;  %v3028_v23 = vld [vmem:[#allocation2 + $0x10] sm:$0xff] }
  0x1c   :  { %105 = vst [vmem:[#allocation2 + $0x78] sm:$0x3f] %v66_v16  ;;  %106 = vst [vmem:[#allocation2 + $0x80] sm:$0x3f] %v67_v17  ;;  %v3030_v24 = vld [vmem:[#allocation2] sm:$0xff]  ;;  %218 = vrot.lane.b32.xlu1 %v3028_v23, %s2943_s25  ;;  %v3036_v25 = vld [vmem:[#allocation2 + $0x8] sm:$0xff] }
  0x1d   :  { %107 = vst [vmem:[#allocation2 + $0x88] sm:$0x3f] %v68_v18  ;;  %108 = vst [vmem:[#allocation2 + $0x90] sm:$0x3f] %v69_v19  ;;  %214 = vrot.lane.b32.xlu0 %v3030_v24, %s2943_s25 }
  0x1e   :  { %109 = vst [vmem:[#allocation2 + $0x98] sm:$0x3f] %v70_v20  ;;  %110 = vst [vmem:[#allocation2 + $0xa0] sm:$0x3f] %v71_v21 }
  0x1f   :  { %111 = vst [vmem:[#allocation2 + $0xa8] sm:$0x3f] %v72_v22  ;;  %112 = vst [vmem:[#allocation2 + $0xb0] sm:$0x3f] %v73_v26 }
  0x20   :  { %934 = vrot.lane.b32.xlu1 %v3030_v24, %s2944_s26  ;;  %113 = vst [vmem:[#allocation2 + $0xb8] sm:$0x3f] %v74_v27 }
  0x21   :  { %216 = vrot.lane.b32.xlu0 %v3036_v25, %s2943_s25 }
  0x22   :  { %7 = vsyncpa [#allocation4], 0  ;;  %114 = vst [vmem:[#allocation2 + $0xc0] sm:$0x3f] %v75_v28  ;;  %v3055_v29 = vld [vmem:[#allocation2 + $0x18] sm:$0xff]  ;;  %s2945_s7 = smov 95   ;;  %v292_v46 = vlaneseq }
  0x23   :  { %v76_v30 = vld [vmem:[%s5208_s0 + $0xc8] sm:$0x3f]  ;;  %v3068_v31 = vld [vmem:[#allocation2 + $0x20] sm:$0xff]  ;;  %v3077_v33 = vld [vmem:[#allocation2 + $0x28] sm:$0xff]  ;;  %v2526_v50 = vrot.slane %v3030_v24, 1  ;;  %v2527_v54 = vrot.slane %v3036_v25, 1 }
  0x24   :  { %938 = vrot.lane.b32.xlu1 %v3028_v23, %s2944_s26  ;;  %115 = vst [vmem:[#allocation2 + $0xc8] sm:$0x3f] %v76_v30  ;;  %v77_v32 = vld [vmem:[%s5208_s0 + $0xd0] sm:$0x3f]  ;;  %v78_v34 = vld [vmem:[%s5208_s0 + $0xd8] sm:$0x3f] }
  0x25   :  { %936 = vrot.lane.b32.xlu0 %v3036_v25, %s2944_s26  ;;  %116 = vst [vmem:[#allocation2 + $0xd0] sm:$0x3f] %v77_v32  ;;  %117 = vst [vmem:[#allocation2 + $0xd8] sm:$0x3f] %v78_v34  ;;  %v3090_v35 = vld [vmem:[#allocation2 + $0x30] sm:$0xff]  ;;  %v3099_v37 = vld [vmem:[#allocation2 + $0x38] sm:$0xff]  ;;  %v2565_v57 = vsub.f32 %v3030_v24, %v2526_v50  ;;  %v2566_v2 = vsub.f32 %v3036_v25, %v2527_v54 }
  0x26   :  { %v79_v36 = vld [vmem:[%s5208_s0 + $0xe0] sm:$0x3f]  ;;  %v80_v38 = vld [vmem:[%s5208_s0 + $0xe8] sm:$0x3f]  ;;  %v3112_v39 = vld [vmem:[#allocation2 + $0x40] sm:$0xff]  ;;  %v3139_v49 = vshrl.u32 %v292_v46, 7 }
  0x27   :  { %118 = vst [vmem:[#allocation2 + $0xe0] sm:$0x3f] %v79_v36  ;;  %119 = vst [vmem:[#allocation2 + $0xe8] sm:$0x3f] %v80_v38  ;;  %v81_v40 = vld [vmem:[%s5208_s0 + $0xf0] sm:$0x3f] }
  0x28   :  { %940 = vrot.lane.b32.xlu1 %v3055_v29, %s2944_s26  ;;  %v3121_v41 = vld [vmem:[#allocation2 + $0x48] sm:$0xff]  ;;  %120 = vst [vmem:[#allocation2 + $0xf0] sm:$0x3f] %v81_v40  ;;  %v169_v42 = vld [vmem:[%s5209_s1] sm:$0xff]  ;;  %v3149_v55 = vld [vmem:[#allocation2 + $0x58] sm:$0xff]  ;;  %v3152_v56 = vsub.s32 0, %v3139_v49 }
  0x29   :  { %220 = vrot.lane.b32.xlu0 %v3055_v29, %s2943_s25  ;;  %v82_v43 = vld [vmem:[%s5208_s0 + $0xf8] sm:$0x3f]  ;;  %v174_v44 = vand.u32 3, %v169_v42  ;;  %v184_v45 = vshra.s32 %v169_v42, 2  ;;  %v199_v47 = vshra.s32 %v169_v42, 4  ;;  %v3137_v48 = vld [vmem:[#allocation2 + $0x50] sm:$0xff] }
  0x2a   :  { %121 = vst [vmem:[#allocation2 + $0xf8] sm:$0x3f] %v82_v43  ;;  %v2528_v58 = vrot.slane %v3028_v23, 1  ;;  %v83_v59 = vld [vmem:[%s5208_s0 + $0x100] sm:$0x3f]  ;;  %v3160_v60 = vsub.s32 1, %v3139_v49 }
  0x2b   :  { %v3142_v51 = vcvt.s32.f32 %v174_v44  ;;  %v189_v52 = vand.u32 3, %v184_v45  ;;  %v204_v53 = vand.u32 3, %v199_v47  ;;  %122 = vst [vmem:[#allocation2 + $0x100] sm:$0x3f] %v83_v59  ;;  %v2646_v0 = vand.u32 1, %v3139_v49  ;;  %v3215_v19 = vld [vmem:[#allocation2 + $0x60] sm:$0xff] }
  0x2c   :  { %1736 = vrot.lane.b32.xlu1 %v3055_v29, %s2945_s7  ;;  %v3174_v1 = vand.u32 127, %v292_v46  ;;  %v3180_v4 = vsub.s32 2, %v3139_v49  ;;  %v2604_v5 = vmax.f32 %v2565_v57, 0.0  ;;  %v2567_v6 = vsub.f32 %v3028_v23, %v2528_v58  ;;  %v84_v7 = vld [vmem:[%s5208_s0 + $0x108] sm:$0x3f]  ;;  %v3249_v43 = vld [vmem:[#allocation2 + $0x68] sm:$0xff] }
  0x2d   :  { %1734 = vrot.lane.b32.xlu0 %v3028_v23, %s2945_s7  ;;  %v3163_v61 = vmin.f32 %v3142_v51, 1.0  ;;  %v3165_v62 = vcvt.s32.f32 %v189_v52  ;;  %v3167_v63 = vcvt.s32.f32 %v204_v53  ;;  %123 = vst [vmem:[#allocation2 + $0x108] sm:$0x3f] %v84_v7  ;;  %vm2645_vm0 = vcmp.lt.s32.totalorder %v3139_v49, 6  ;;  %v170_v57 = vld [vmem:[%s5209_s1 + $0x8] sm:$0xff]  ;;  %v3470_v21 = vld [vmem:[#allocation2 + $0x88] sm:$0xff] }
  0x2e   :  { %vm3199_vm1 = vcmp.eq.s32.totalorder %v2646_v0, 0  ;;  %v2529_v14 = vrot.slane %v3055_v29, 1  ;;  %v3213_v17 = vsub.s32 3, %v3139_v49  ;;  %v2605_v18 = vmax.f32 %v2566_v2, 0.0  ;;  %v85_v58 = vld [vmem:[%s5208_s0 + $0x110] sm:$0x3f] }
  0x2f   :  { %v3193_v11 = vmin.f32 %v3165_v62, 1.0  ;;  %v3196_v12 = vmin.f32 %v3167_v63, 1.0  ;;  %v3221_v22 = vmul.f32 1.882353, %v2604_v5  ;;  %v2606_v26 = vmax.f32 %v2567_v6, 0.0  ;;  %vm3233_vm2 = vmand %vm2645_vm0, %vm3199_vm1  ;;  %v3359_v44 = vld [vmem:[#allocation2 + $0x78] sm:$0xff] }
  0x30   :  { %222 = vrot.lane.b32.xlu1 %v3068_v31, %s2943_s25  ;;  %v2530_v34 = vrot.slane %v3068_v31, 1  ;;  %v2568_v42 = vsub.f32 %v3055_v29, %v2529_v14  ;;  %v3255_v46 = vmul.f32 1.882353, %v2605_v18  ;;  %v3258_v47 = vsub.s32 4, %v3139_v49  ;;  %124 = vst [vmem:[#allocation2 + $0x110] sm:$0x3f] %v85_v58 }
  0x31   :  { %1738 = vrot.lane.b32.xlu0 %v3068_v31, %s2945_s7  ;;  %v3267_v54 = vmul.f32 1.882353, %v2606_v26  ;;  %v3278_v0 = vsub.s32 5, %v3139_v49  ;;  %v2531_v5 = vrot.slane %v3077_v33, 1  ;;  %v2532_v14 = vrot.slane %v3090_v35, 1  ;;  %v3534_v36 = vld [vmem:[#allocation2 + $0x90] sm:$0xff] }
  0x32   :  { %v2569_v2 = vsub.f32 %v3068_v31, %v2530_v34  ;;  %v2607_v13 = vmax.f32 %v2568_v42, 0.0  ;;  %v185_v58 = vshra.s32 %v170_v57, 2  ;;  %v86_v26 = vld [vmem:[%s5208_s0 + $0x118] sm:$0x3f]  ;;  %v2533_v53 = vrot.slane %v3099_v37, 1  ;;  %s2872_s18 = sshll.u32 %s5210_s2, 4  ;;  %s2873_s18 = int_to_ptr.vmem [resolvable:$true] %s2872_s18 }
  0x33   :  { %v2570_v50 = vsub.f32 %v3077_v33, %v2531_v5  ;;  %125 = vst [vmem:[#allocation2 + $0x118] sm:$0x3f] %v86_v26  ;;  %v2571_v59 = vsub.f32 %v3090_v35, %v2532_v14  ;;  %v3328_v5 = vsub.s32 6, %v3139_v49  ;;  %v200_v6 = vshra.s32 %v170_v57, 4  ;;  %s2928_s21 = scalar_lea.vmem %s2873_s18, 16  ;;  %p2933_p1 = scmp.lt.s32.totalorder %s2873_s18, %s2873_s18 }
  0x34   :  { %1740 = vrot.lane.b32.xlu1 %v3077_v33, %s2945_s7  ;;  %v2608_v42 = vmax.f32 %v2569_v2, 0.0  ;;  %v3317_v7 = vmul.f32 1.882353, %v2607_v13  ;;  %v190_v26 = vand.u32 3, %v185_v58  ;;  %v3330_v13 = vld [vmem:[#allocation2 + $0x70] sm:$0xff]  ;;  %v175_v34 = vand.u32 3, %v170_v57  ;;  %p2929_p0 = scmp.ne.s32.totalorder %s2873_s18, %s2928_s21  ;;  %p2934_p2 = scmp.lt.s32.totalorder %s2928_s21, %s2928_s21 }
  0x35   :  { %942 = vrot.lane.b32.xlu0 %v3068_v31, %s2944_s26  ;;  %v3341_v2 = vsub.s32 7, %v3139_v49  ;;  %v2609_v45 = vmax.f32 %v2570_v50, 0.0  ;;  %v2534_v58 = vrot.slane %v3112_v39, 1  ;;  %v2610_v14 = vmax.f32 %v2571_v59, 0.0 }
  0x36   :  { %v3338_v52 = vmul.f32 1.882353, %v2608_v42  ;;  %v2572_v40 = vsub.f32 %v3099_v37, %v2533_v53  ;;  %v3356_v50 = vcvt.s32.f32 %v190_v26  ;;  %v205_v57 = vand.u32 3, %v200_v6  ;;  %p2935_p3 = por %p2934_p2, %p2933_p1 }
  0x37   :  { %v2535_v42 = vrot.slane %v3121_v41, 1  ;;  %v3374_v49 = vmul.f32 1.882353, %v2609_v45  ;;  %v2573_v18 = vsub.f32 %v3112_v39, %v2534_v58  ;;  %v3384_v59 = vmul.f32 1.882353, %v2610_v14 }
  0x38   :  { %944 = vrot.lane.b32.xlu1 %v3077_v33, %s2944_s26  ;;  %v2611_v26 = vmax.f32 %v2572_v40, 0.0  ;;  %v3393_v45 = vcvt.s32.f32 %v205_v57  ;;  %v2536_v53 = vrot.slane %v3137_v48, 1  ;;  %v88_v40 = vld [vmem:[%s5208_s0 + $0x128] sm:$0x3f]  ;;  %v2537_v30 = vrot.slane %v3149_v55, 1  ;;  %p2936_p4 = pnand %p2935_p3, %p2929_p0 }
  0x39   :  { %224 = vrot.lane.b32.xlu0 %v3077_v33, %s2943_s25  ;;  %v2574_v58 = vsub.f32 %v3121_v41, %v2535_v42  ;;  %v2612_v14 = vmax.f32 %v2573_v18, 0.0  ;;  %127 = vst [vmem:[#allocation2 + $0x128] sm:$0x3f] %v88_v40  ;;  %v2539_v18 = vrot.slane %v3249_v43, 1  ;;  %v89_v57 = vld [vmem:[%s5208_s0 + $0x130] sm:$0x3f] }
  0x3a   :  { %5248 = vst [vmem:[#allocation8_spill] sm:$0xff] %v3393_v45  ;;  %v3423_v38 = vmul.f32 1.882353, %v2611_v26  ;;  %v2575_v6 = vsub.f32 %v3137_v48, %v2536_v53  ;;  %v2538_v53 = vrot.slane %v3215_v19, 1  ;;  %v2576_v20 = vsub.f32 %v3149_v55, %v2537_v30  ;;  %v171_v26 = vld [vmem:[%s5209_s1 + $0x10] sm:$0xff] }
  0x3b   :  { %v2613_v42 = vmax.f32 %v2574_v58, 0.0  ;;  %vm128_vm3 = vcmask 398336   ;;  %v176_v27 = vand.u32 3, %v171_v26  ;;  %vm294_vm4 = vcmp.lt.s32.totalorder %v3174_v1, 127 }
  0x3c   :  { %226 = vrot.lane.b32.xlu1 %v3090_v35, %s2943_s25  ;;  %5250 = vst [vmem:[#allocation10_spill] sm:$0xff] %v3423_v38  ;;  %v2614_v40 = vmax.f32 %v2575_v6, 0.0  ;;  %v2540_v6 = vrot.slane %v3330_v13, 1  ;;  %129 = vst.msk [vmem:[#allocation2 + $0x130] sm:$0x3f] %vm128_vm3, %v89_v57  ;;  %v2615_v28 = vmax.f32 %v2576_v20, 0.0 }
  0x3d   :  { %1742 = vrot.lane.b32.xlu0 %v3090_v35, %s2945_s7  ;;  %v3468_v58 = vmul.f32 1.882353, %v2613_v42  ;;  %v2577_v42 = vsub.f32 %v3215_v19, %v2538_v53  ;;  %v3562_v20 = vld [vmem:[#allocation2 + $0x98] sm:$0xff]  ;;  %vm1012_vm5 = vcmp.lt.s32.totalorder %v3174_v1, 111  ;;  %vm1808_vm6 = vcmp.lt.s32.totalorder %v3174_v1, 95 }
  0x3e   :  { %v3506_v30 = vmul.f32 1.882353, %v2614_v40  ;;  %v2578_v40 = vsub.f32 %v3249_v43, %v2539_v18  ;;  %v2579_v57 = vsub.f32 %v3330_v13, %v2540_v6  ;;  %v3540_v16 = vmul.f32 1.882353, %v2615_v28 }
  0x3f   :  { %5253 = vst [vmem:[#allocation13_spill] sm:$0xff] %v3468_v58  ;;  %v2616_v53 = vmax.f32 %v2577_v42, 0.0  ;;  %v201_v42 = vshra.s32 %v171_v26, 4  ;;  %v5270_v58 = vrot.slane %v3163_v61, %v3152_v56 }
  0x40   :  { %1744 = vrot.lane.b32.xlu1 %v3099_v37, %s2945_s7  ;;  %5254 = vst [vmem:[#allocation14_spill] sm:$0xff] %v3506_v30  ;;  %5255 = vst [vmem:[#allocation15_spill] sm:$0xff] %v3540_v16  ;;  %v2618_v10 = vmax.f32 %v2579_v57, 0.0 }
  0x41   :  { %946 = vrot.lane.b32.xlu0 %v3090_v35, %s2944_s26  ;;  %v3367_v35 = vcvt.s32.f32 %v175_v34 }
  0x43   :  { %5246 = vst [vmem:[#allocation6_spill] sm:$0xff] %v3367_v35  ;;  %v3404_v34 = vmin.f32 %v3367_v35, 1.0 }
  0x44   :  { %948 = vrot.lane.b32.xlu1 %v3099_v37, %s2944_s26 }
  0x45   :  { %228 = vrot.lane.b32.xlu0 %v3099_v37, %s2943_s25  ;;  %v87_v37 = vld [vmem:[%s5208_s0 + $0x120] sm:$0x3f]  ;;  %5249 = vst [vmem:[#allocation9_spill] sm:$0xff] %v3404_v34 }
  0x46   :  { %126 = vst [vmem:[#allocation2 + $0x120] sm:$0x3f] %v87_v37  ;;  %v3432_v37 = vmin.f32 %v3393_v45, 1.0 }
  0x48   :  { %230 = vrot.lane.b32.xlu1 %v3112_v39, %s2943_s25  ;;  %5251 = vst [vmem:[#allocation11_spill] sm:$0xff] %v3432_v37 }
  0x49   :  { %1746 = vrot.lane.b32.xlu0 %v3112_v39, %s2945_s7 }
  0x4c   :  { %1748 = vrot.lane.b32.xlu1 %v3121_v41, %s2945_s7 }
  0x4d   :  { %950 = vrot.lane.b32.xlu0 %v3112_v39, %s2944_s26  ;;  %v3391_v39 = vmin.f32 %v3356_v50, 1.0 }
  0x4f   :  { %5247 = vst [vmem:[#allocation7_spill] sm:$0xff] %v3391_v39 }
  0x50   :  { %952 = vrot.lane.b32.xlu1 %v3121_v41, %s2944_s26 }
  0x51   :  { %232 = vrot.lane.b32.xlu0 %v3121_v41, %s2943_s25  ;;  %v3435_v41 = vld [vmem:[#allocation2 + $0x80] sm:$0xff] }
  0x52   :  { %v2542_v15 = vrot.slane %v3435_v41, 1 }
  0x54   :  { %234 = vrot.lane.b32.xlu1 %v3137_v48, %s2943_s25 }
  0x55   :  { %1750 = vrot.lane.b32.xlu0 %v3137_v48, %s2945_s7 }
  0x58   :  { %1752 = vrot.lane.b32.xlu1 %v3149_v55, %s2945_s7 }
  0x59   :  { %954 = vrot.lane.b32.xlu0 %v3137_v48, %s2944_s26  ;;  %v3448_v48 = vmul.f32 1.882353, %v2612_v14  ;;  %v2541_v14 = vrot.slane %v3359_v44, 1 }
  0x5b   :  { %5252 = vst [vmem:[#allocation12_spill] sm:$0xff] %v3448_v48  ;;  %v2580_v28 = vsub.f32 %v3359_v44, %v2541_v14 }
  0x5c   :  { %956 = vrot.lane.b32.xlu1 %v3149_v55, %s2944_s26 }
  0x5d   :  { %236 = vrot.lane.b32.xlu0 %v3149_v55, %s2943_s25  ;;  %v186_v55 = vshra.s32 %v171_v26, 2  ;;  %v2619_v14 = vmax.f32 %v2580_v28, 0.0 }
  0x5f   :  { %v191_v18 = vand.u32 3, %v186_v55  ;;  %v2617_v55 = vmax.f32 %v2578_v40, 0.0  ;;  %v206_v40 = vand.u32 3, %v201_v42  ;;  %v3624_v28 = vmul.f32 1.882353, %v2619_v14 }
  0x60   :  { %238 = vrot.lane.b32.xlu1 %v3215_v19, %s2943_s25 }
  0x61   :  { %1754 = vrot.lane.b32.xlu0 %v3215_v19, %s2945_s7  ;;  %5262 = vst [vmem:[#allocation22_spill] sm:$0xff] %v3624_v28 }
  0x64   :  { %1756 = vrot.lane.b32.xlu1 %v3249_v43, %s2945_s7 }
  0x65   :  { %958 = vrot.lane.b32.xlu0 %v3215_v19, %s2944_s26  ;;  %v3580_v19 = vmul.f32 1.882353, %v2617_v55  ;;  %v2543_v55 = vrot.slane %v3470_v21, 1 }
  0x67   :  { %5258 = vst [vmem:[#allocation18_spill] sm:$0xff] %v3580_v19 }
  0x68   :  { %960 = vrot.lane.b32.xlu1 %v3249_v43, %s2944_s26 }
  0x69   :  { %240 = vrot.lane.b32.xlu0 %v3249_v43, %s2943_s25  ;;  %v3546_v43 = vmul.f32 1.882353, %v2616_v53  ;;  %v3559_v53 = vcvt.s32.f32 %v191_v18  ;;  %v3639_v18 = vld [vmem:[#allocation2 + $0xa0] sm:$0xff] }
  0x6b   :  { %5256 = vst [vmem:[#allocation16_spill] sm:$0xff] %v3546_v43  ;;  %v3596_v26 = vmin.f32 %v3559_v53, 1.0 }
  0x6c   :  { %242 = vrot.lane.b32.xlu1 %v3330_v13, %s2943_s25 }
  0x6d   :  { %1758 = vrot.lane.b32.xlu0 %v3330_v13, %s2945_s7  ;;  %5260 = vst [vmem:[#allocation20_spill] sm:$0xff] %v3596_v26 }
  0x70   :  { %1760 = vrot.lane.b32.xlu1 %v3359_v44, %s2945_s7 }
  0x71   :  { %962 = vrot.lane.b32.xlu0 %v3330_v13, %s2944_s26  ;;  %v3571_v13 = vcvt.s32.f32 %v176_v27  ;;  %v3586_v27 = vmul.f32 1.882353, %v2618_v10  ;;  %v2581_v10 = vsub.f32 %v3435_v41, %v2542_v15 }
  0x73   :  { %5257 = vst [vmem:[#allocation17_spill] sm:$0xff] %v3571_v13  ;;  %5259 = vst [vmem:[#allocation19_spill] sm:$0xff] %v3586_v27  ;;  %v3608_v42 = vmin.f32 %v3571_v13, 1.0  ;;  %v2620_v14 = vmax.f32 %v2581_v10, 0.0  ;;  %v2544_v27 = vrot.slane %v3534_v36, 1 }
  0x74   :  { %964 = vrot.lane.b32.xlu1 %v3359_v44, %s2944_s26 }
  0x75   :  { %244 = vrot.lane.b32.xlu0 %v3359_v44, %s2943_s25  ;;  %v3598_v44 = vcvt.s32.f32 %v206_v40  ;;  %5261 = vst [vmem:[#allocation21_spill] sm:$0xff] %v3608_v42  ;;  %v3672_v6 = vmul.f32 1.882353, %v2620_v14  ;;  %v2583_v19 = vsub.f32 %v3534_v36, %v2544_v27 }
  0x77   :  { %v3637_v57 = vmin.f32 %v3598_v44, 1.0  ;;  %5264 = vst [vmem:[#allocation24_spill] sm:$0xff] %v3672_v6 }
  0x78   :  { %246 = vrot.lane.b32.xlu1 %v3435_v41, %s2943_s25 }
  0x79   :  { %1762 = vrot.lane.b32.xlu0 %v3435_v41, %s2945_s7 }
  0x7c   :  { %1764 = vrot.lane.b32.xlu1 %v3470_v21, %s2945_s7 }
  0x7d   :  { %966 = vrot.lane.b32.xlu0 %v3435_v41, %s2944_s26  ;;  %v2582_v41 = vsub.f32 %v3470_v21, %v2543_v55 }
  0x7f   :  { %v2621_v9 = vmax.f32 %v2582_v41, 0.0  ;;  %v151_v41 = vld [vmem:[#allocation2 + $0xa8] sm:$0xff] }
  0x80   :  { %968 = vrot.lane.b32.xlu1 %v3470_v21, %s2944_s26 }
  0x81   :  { %248 = vrot.lane.b32.xlu0 %v3470_v21, %s2943_s25  ;;  %v3682_v28 = vmul.f32 1.882353, %v2621_v9  ;;  %v2622_v21 = vmax.f32 %v2583_v19, 0.0 }
  0x83   :  { %5265 = vst [vmem:[#allocation25_spill] sm:$0xff] %v3682_v28  ;;  %v3716_v27 = vmul.f32 1.882353, %v2622_v21 }
  0x84   :  { %250 = vrot.lane.b32.xlu1 %v3534_v36, %s2943_s25 }
  0x85   :  { %1766 = vrot.lane.b32.xlu0 %v3534_v36, %s2945_s7  ;;  %5267 = vst [vmem:[#allocation27_spill] sm:$0xff] %v3716_v27 }
  0x88   :  { %1768 = vrot.lane.b32.xlu1 %v3562_v20, %s2945_s7 }
  0x89   :  { %970 = vrot.lane.b32.xlu0 %v3534_v36, %s2944_s26 }
  0x8c   :  { %972 = vrot.lane.b32.xlu1 %v3562_v20, %s2944_s26 }
  0x8d   :  { %252 = vrot.lane.b32.xlu0 %v3562_v20, %s2943_s25 }
  0x8e   :  { %v3648_v8 = vpop.permute.xlu1 %218 }
  0x8f   :  { %v3650_v15 = vpop.permute.xlu0 %214 }
  0x90   :  { %5263 = vst [vmem:[#allocation23_spill] sm:$0xff] %v3650_v15  ;;  %254 = vrot.lane.b32.xlu1 %v3639_v18, %s2943_s25 }
  0x91   :  { %1770 = vrot.lane.b32.xlu0 %v3639_v18, %s2945_s7 }
  0x92   :  { %v3685_v40 = vpop.permute.xlu1 %934 }
  0x93   :  { %5266 = vst [vmem:[#allocation26_spill] sm:$0xff] %v3685_v40  ;;  %v217_v14 = vpop.permute.xlu0 %216 }
  0x94   :  { %v331_v9 = vsel %vm294_vm4, %v217_v14, %v3648_v8  ;;  %v332_v36 = vsel %vm294_vm4, %v3650_v15, %v217_v14  ;;  %1772 = vrot.lane.b32.xlu1 %v151_v41, %s2945_s7 }
  0x95   :  { %v334_v55 = vsub.f32 %v3030_v24, %v332_v36  ;;  %v335_v10 = vsub.f32 %v3036_v25, %v331_v9  ;;  %974 = vrot.lane.b32.xlu0 %v3639_v18, %s2944_s26  ;;  %v5269_v9 = vrot.slane %v3142_v51, %v3160_v60 }
  0x96   :  { %v939_v3 = vpop.permute.xlu1 %938 }
  0x97   :  { %v373_v43 = vmul.f32 %v334_v55, %v334_v55  ;;  %v374_v15 = vmul.f32 %v335_v10, %v335_v10  ;;  %v656_v16 = vmax.f32 %v334_v55, 0.0  ;;  %v657_v30 = vmax.f32 %v335_v10, 0.0  ;;  %v937_v6 = vpop.permute.xlu0 %936 }
  0x98   :  { %v1049_v14 = vsel %vm1012_vm5, %v937_v6, %v939_v3  ;;  %v1050_v21 = vsel %vm1012_vm5, %v3685_v40, %v937_v6  ;;  %v5268_v10 = vrot.slane %v3142_v51, %v3152_v56  ;;  %v5271_v6 = vrot.slane %v3163_v61, %v3160_v60  ;;  %976 = vrot.lane.b32.xlu1 %v151_v41, %s2944_s26 }
  0x99   :  { %v613_v28 = vmul.f32 %v5269_v9, %v374_v15  ;;  %v895_v48 = vmul.f32 %v5270_v58, %v656_v16  ;;  %v1052_v36 = vsub.f32 %v3030_v24, %v1050_v21  ;;  %v1053_v19 = vsub.f32 %v3036_v25, %v1049_v14  ;;  %256 = vrot.lane.b32.xlu0 %v151_v41, %s2943_s25  ;;  %v153_v14 = vld [vmem:[#allocation2 + $0xb8] sm:$0xff] }
  0x9a   :  { %v612_v55 = vmul.f32 %v5268_v10, %v373_v43  ;;  %v896_v40 = vmul.f32 %v5271_v6, %v657_v30  ;;  %v152_v43 = vld [vmem:[#allocation2 + $0xb0] sm:$0xff]  ;;  %v3753_v16 = vpop.permute.xlu1 %940  ;;  %v2545_v21 = vrot.slane %v3562_v20, 1  ;;  %v5272_v41 = vrot.slane %v3165_v62, %v3152_v56 }
  0x9b   :  { %v221_v58 = vpop.permute.xlu0 %220  ;;  %v1091_v10 = vmul.f32 %v1052_v36, %v1052_v36  ;;  %v1092_v6 = vmul.f32 %v1053_v19, %v1053_v19  ;;  %v1413_v15 = vmax.f32 %v1052_v36, 0.0  ;;  %v1414_v27 = vmax.f32 %v1053_v19, 0.0 }
  0x9c   :  { %v1048_v9 = vsel %vm1012_vm5, %v939_v3, %v3753_v16  ;;  %v330_v30 = vsel %vm294_vm4, %v3648_v8, %v221_v58  ;;  %258 = vrot.lane.b32.xlu1 %v152_v43, %s2943_s25  ;;  %v5273_v19 = vrot.slane %v3165_v62, %v3160_v60  ;;  %v5274_v3 = vrot.slane %v3193_v11, %v3152_v56 }
  0x9d   :  { %v1330_v36 = vmul.f32 %v5272_v41, %v1091_v10  ;;  %v5275_v8 = vrot.slane %v3193_v11, %v3160_v60  ;;  %1774 = vrot.lane.b32.xlu0 %v152_v43, %s2945_s7  ;;  %v1054_v38 = vsub.f32 %v3028_v23, %v1048_v9  ;;  %v336_v37 = vsub.f32 %v3028_v23, %v330_v30 }
  0x9e   :  { %v1331_v42 = vmul.f32 %v5273_v19, %v1092_v6  ;;  %v1652_v13 = vmul.f32 %v5274_v3, %v1413_v15  ;;  %v1737_v41 = vpop.permute.xlu1 %1736  ;;  %v2584_v6 = vsub.f32 %v3562_v20, %v2545_v21 }
  0x9f   :  { %v1653_v26 = vmul.f32 %v5275_v8, %v1414_v27  ;;  %v3788_v10 = vpop.permute.xlu0 %1734  ;;  %v1369_v15 = vadd.f32 %v1330_v36, %v612_v55  ;;  %v1093_v27 = vmul.f32 %v1054_v38, %v1054_v38  ;;  %v1415_v8 = vmax.f32 %v1054_v38, 0.0 }
  0xa0   :  { %5276 = vst [vmem:[#allocation28_spill] sm:$0xff] %v3788_v10  ;;  %v1370_v3 = vadd.f32 %v1331_v42, %v613_v28  ;;  %v1691_v45 = vadd.f32 %v1652_v13, %v895_v48  ;;  %v375_v35 = vmul.f32 %v336_v37, %v336_v37  ;;  %v658_v39 = vmax.f32 %v336_v37, 0.0  ;;  %1776 = vrot.lane.b32.xlu1 %v153_v14, %s2945_s7 }
  0xa1   :  { %v1692_v34 = vadd.f32 %v1653_v26, %v896_v40  ;;  %v1844_v9 = vsel %vm1808_vm6, %v3788_v10, %v1737_v41  ;;  %978 = vrot.lane.b32.xlu0 %v152_v43, %s2944_s26  ;;  %v2623_v20 = vmax.f32 %v2584_v6, 0.0  ;;  %v2546_v42 = vrot.slane %v3639_v18, 1 }
  0xa2   :  { %v5277_v48 = vrot.slane %v3165_v62, %v3180_v4  ;;  %v5278_v37 = vrot.slane %v3193_v11, %v3180_v4  ;;  %v5279_v26 = vrot.slane %v3142_v51, %v3180_v4  ;;  %v5280_v40 = vrot.slane %v3163_v61, %v3180_v4  ;;  %v223_v43 = vpop.permute.xlu1 %222 }
  0xa3   :  { %v1739_v21 = vpop.permute.xlu0 %1738  ;;  %v1848_v36 = vsub.f32 %v3030_v24, %v1844_v9  ;;  %v329_v6 = vsel %vm294_vm4, %v221_v58, %v223_v43  ;;  %v154_v24 = vld [vmem:[#allocation2 + $0xc0] sm:$0xff] }
  0xa4   :  { %v1332_v38 = vmul.f32 %v5277_v48, %v1093_v27  ;;  %v1654_v13 = vmul.f32 %v5278_v37, %v1415_v8  ;;  %v614_v28 = vmul.f32 %v5279_v26, %v375_v35  ;;  %v897_v55 = vmul.f32 %v5280_v40, %v658_v39  ;;  %980 = vrot.lane.b32.xlu1 %v153_v14, %s2944_s26 }
  0xa5   :  { %v1843_v27 = vsel %vm1808_vm6, %v1737_v41, %v1739_v21  ;;  %v3818_v48 = vmul.f32 1.882353, %v2623_v20  ;;  %v337_v35 = vsub.f32 %v3055_v29, %v329_v6  ;;  %v1887_v39 = vmul.f32 %v1848_v36, %v1848_v36  ;;  %260 = vrot.lane.b32.xlu0 %v153_v14, %s2943_s25 }
  0xa6   :  { %v1371_v8 = vadd.f32 %v1332_v38, %v614_v28  ;;  %v1693_v37 = vadd.f32 %v1654_v13, %v897_v55  ;;  %v1849_v26 = vsub.f32 %v3036_v25, %v1843_v27  ;;  %v2209_v40 = vmax.f32 %v1848_v36, 0.0  ;;  %v1741_v28 = vpop.permute.xlu1 %1740 }
  0xa7   :  { %v2585_v41 = vsub.f32 %v3639_v18, %v2546_v42  ;;  %v376_v9 = vmul.f32 %v337_v35, %v337_v35  ;;  %v659_v20 = vmax.f32 %v337_v35, 0.0  ;;  %v943_v55 = vpop.permute.xlu0 %942  ;;  %v5281_v25 = vrot.slane %v3167_v63, %v3152_v56 }
  0xa8   :  { %v1888_v38 = vmul.f32 %v1849_v26, %v1849_v26  ;;  %v2210_v13 = vmax.f32 %v1849_v26, 0.0  ;;  %v5282_v14 = vrot.slane %v3196_v12, %v3152_v56  ;;  %v1842_v27 = vsel %vm1808_vm6, %v1739_v21, %v1741_v28  ;;  %262 = vrot.lane.b32.xlu1 %v154_v24, %s2943_s25 }
  0xa9   :  { %v2126_v6 = vmul.f32 %v5281_v25, %v1887_v39  ;;  %v1047_v18 = vsel %vm1012_vm5, %v3753_v16, %v943_v55  ;;  %v5283_v42 = vrot.slane %v3142_v51, %v3213_v17  ;;  %v5284_v26 = vrot.slane %v3163_v61, %v3213_v17  ;;  %1778 = vrot.lane.b32.xlu0 %v154_v24, %s2945_s7 }
  0xaa   :  { %v2448_v36 = vmul.f32 %v5282_v14, %v2209_v40  ;;  %v5285_v39 = vrot.slane %v3167_v63, %v3160_v60  ;;  %v5286_v40 = vrot.slane %v3196_v12, %v3160_v60  ;;  %v1850_v30 = vsub.f32 %v3028_v23, %v1842_v27  ;;  %v945_v19 = vpop.permute.xlu1 %944 }
  0xab   :  { %v615_v35 = vmul.f32 %v5283_v42, %v376_v9  ;;  %v898_v58 = vmul.f32 %v5284_v26, %v659_v20  ;;  %v2165_v14 = vadd.f32 %v2126_v6, %v1369_v15  ;;  %v1055_v9 = vsub.f32 %v3055_v29, %v1047_v18  ;;  %v155_v42 = vld [vmem:[#allocation2 + $0xc8] sm:$0xff]  ;;  %v225_v10 = vpop.permute.xlu0 %224 }
  0xac   :  { %v2127_v25 = vmul.f32 %v5285_v39, %v1888_v38  ;;  %v2449_v21 = vmul.f32 %v5286_v40, %v2210_v13  ;;  %v2487_v16 = vadd.f32 %v2448_v36, %v1691_v45  ;;  %v2624_v38 = vmax.f32 %v2585_v41, 0.0  ;;  %1780 = vrot.lane.b32.xlu1 %v155_v42, %s2945_s7 }
  0xad   :  { %v1222_v39 = vrot.slane %v3559_v53, %v3278_v0  ;;  %v5287_v15 = vsel %vm3233_vm2, %v3221_v22, 0.0  ;;  %v1889_v13 = vmul.f32 %v1850_v30, %v1850_v30  ;;  %v2211_v23 = vmax.f32 %v1850_v30, 0.0  ;;  %982 = vrot.lane.b32.xlu0 %v154_v24, %s2944_s26 }
  0xae   :  { %v2166_v20 = vadd.f32 %v2127_v25, %v1370_v3  ;;  %v2488_v26 = vadd.f32 %v2449_v21, %v1692_v34  ;;  %v2727_v45 = vadd.f32 %v5287_v15, %v2487_v16  ;;  %v1094_v6 = vmul.f32 %v1055_v9, %v1055_v9 }
  0xaf   :  { %v5288_v29 = vsel %vm3233_vm2, %v3255_v46, 0.0  ;;  %v1416_v36 = vmax.f32 %v1055_v9, 0.0  ;;  %v1046_v41 = vsel %vm1012_vm5, %v943_v55, %v945_v19  ;;  %v5289_v27 = vrot.slane %v3167_v63, %v3180_v4  ;;  %v227_v9 = vpop.permute.xlu1 %226 }
  0xb0   :  { %v2728_v3 = vadd.f32 %v5288_v29, %v2488_v26  ;;  %v2766_v34 = vadd.f32 %v2166_v20, %v2165_v14  ;;  %v5290_v30 = vrot.slane %v3196_v12, %v3180_v4  ;;  %v5291_v25 = vrot.slane %v3165_v62, %v3213_v17  ;;  %v1743_v20 = vpop.permute.xlu0 %1742  ;;  %984 = vrot.lane.b32.xlu1 %v155_v42, %s2944_s26 }
  0xb1   :  { %v2128_v22 = vmul.f32 %v5289_v27, %v1889_v13  ;;  %v1056_v40 = vsub.f32 %v3068_v31, %v1046_v41  ;;  %v5292_v55 = vrot.slane %v3193_v11, %v3213_v17  ;;  %v328_v16 = vsel %vm294_vm4, %v223_v43, %v225_v10  ;;  %264 = vrot.lane.b32.xlu0 %v155_v42, %s2943_s25 }
  0xb2   :  { %v2450_v18 = vmul.f32 %v5290_v30, %v2211_v23  ;;  %v1333_v46 = vmul.f32 %v5291_v25, %v1094_v6  ;;  %v2816_v21 = vadd.f32 %v2728_v3, %v2727_v45  ;;  %v3884_v26 = vmul.f32 1.882353, %v2624_v38 }
  0xb3   :  { %v1655_v14 = vmul.f32 %v5292_v55, %v1416_v36  ;;  %v2167_v15 = vadd.f32 %v2128_v22, %v1371_v8  ;;  %v1095_v6 = vmul.f32 %v1056_v40, %v1056_v40  ;;  %v1417_v41 = vmax.f32 %v1056_v40, 0.0  ;;  %v3904_v22 = vpop.permute.xlu1 %1744 }
  0xb4   :  { %v2489_v13 = vadd.f32 %v2450_v18, %v1693_v37  ;;  %v1372_v23 = vadd.f32 %v1333_v46, %v615_v35  ;;  %v338_v24 = vsub.f32 %v3068_v31, %v328_v16  ;;  %v327_v45 = vsel %vm294_vm4, %v225_v10, %v227_v9  ;;  %v156_v31 = vld [vmem:[#allocation2 + $0xd0] sm:$0xff]  ;;  %v2890_v46 = vld [vmem:[#allocation2 + $0x18] sm:$0xff] }
  0xb5   :  { %v1694_v29 = vadd.f32 %v1655_v14, %v898_v58  ;;  %v5293_v43 = vsel %vm3233_vm2, %v3267_v54, 0.0  ;;  %v2767_v38 = vadd.f32 %v2766_v34, %v2167_v15  ;;  %v5294_v8 = vrot.slane %v3165_v62, %v3258_v47  ;;  %v947_v34 = vpop.permute.xlu0 %946  ;;  %266 = vrot.lane.b32.xlu1 %v156_v31, %s2943_s25  ;;  %1782 = vrot.lane.b32.xlu0 %v156_v31, %s2945_s7 }
  0xb6   :  { %v2729_v3 = vadd.f32 %v5293_v43, %v2489_v13  ;;  %v339_v58 = vsub.f32 %v3077_v33, %v327_v45  ;;  %v5295_v10 = vrot.slane %v3193_v11, %v3258_v47  ;;  %v377_v36 = vmul.f32 %v338_v24, %v338_v24  ;;  %v157_v45 = vld [vmem:[#allocation2 + $0xd8] sm:$0xff] }
  0xb7   :  { %v1334_v37 = vmul.f32 %v5294_v8, %v1095_v6  ;;  %v660_v27 = vmax.f32 %v338_v24, 0.0  ;;  %v1841_v54 = vsel %vm1808_vm6, %v1741_v28, %v1743_v20  ;;  %v5296_v42 = vrot.slane %v3142_v51, %v3258_v47 }
  0xb8   :  { %v1656_v35 = vmul.f32 %v5295_v10, %v1417_v41  ;;  %v2817_v30 = vadd.f32 %v2816_v21, %v2729_v3  ;;  %v378_v18 = vmul.f32 %v339_v58, %v339_v58  ;;  %v661_v25 = vmax.f32 %v339_v58, 0.0  ;;  %v2891_v3 = vld [vmem:[#allocation2 + $0x20] sm:$0xff]  ;;  %v949_v10 = vpop.permute.xlu1 %948 }
  0xb9   :  { %v1851_v33 = vsub.f32 %v2890_v46, %v1841_v54  ;;  %v616_v40 = vmul.f32 %v5296_v42, %v377_v36  ;;  %v5297_v55 = vrot.slane %v3163_v61, %v3258_v47  ;;  %v1840_v28 = vsel %vm1808_vm6, %v1743_v20, %v3904_v22  ;;  %v229_v36 = vpop.permute.xlu0 %228  ;;  %1784 = vrot.lane.b32.xlu1 %v157_v45, %s2945_s7 }
  0xba   :  { %v1045_v16 = vsel %vm1012_vm5, %v945_v19, %v947_v34  ;;  %v5298_v21 = vrot.slane %v3142_v51, %v3278_v0  ;;  %v5299_v13 = vrot.slane %v3163_v61, %v3278_v0  ;;  %v1852_v8 = vsub.f32 %v2891_v3, %v1840_v28  ;;  %v2892_v19 = vld [vmem:[#allocation2 + $0x28] sm:$0xff]  ;;  %v2893_v28 = vld [vmem:[#allocation2 + $0x30] sm:$0xff]  ;;  %986 = vrot.lane.b32.xlu0 %v156_v31, %s2944_s26 }
  0xbb   :  { %v899_v14 = vmul.f32 %v5297_v55, %v660_v27  ;;  %v1890_v41 = vmul.f32 %v1851_v33, %v1851_v33  ;;  %v2212_v24 = vmax.f32 %v1851_v33, 0.0  ;;  %v1373_v43 = vadd.f32 %v1334_v37, %v616_v40 }
  0xbc   :  { %v617_v15 = vmul.f32 %v5298_v21, %v378_v18  ;;  %v900_v6 = vmul.f32 %v5299_v13, %v661_v25  ;;  %v1057_v58 = vsub.f32 %v2892_v19, %v1045_v16  ;;  %v5300_v27 = vrot.slane %v3167_v63, %v3213_v17 }
  0xbd   :  { %v1695_v20 = vadd.f32 %v1656_v35, %v899_v14  ;;  %v5301_v18 = vrot.slane %v3196_v12, %v3213_v17  ;;  %v1044_v46 = vsel %vm1012_vm5, %v947_v34, %v949_v10  ;;  %v326_v37 = vsel %vm294_vm4, %v227_v9, %v229_v36  ;;  %988 = vrot.lane.b32.xlu1 %v157_v45, %s2944_s26 }
  0xbe   :  { %v2129_v54 = vmul.f32 %v5300_v27, %v1890_v41  ;;  %v1891_v35 = vmul.f32 %v1852_v8, %v1852_v8  ;;  %v2213_v33 = vmax.f32 %v1852_v8, 0.0  ;;  %v1096_v42 = vmul.f32 %v1057_v58, %v1057_v58  ;;  %v3949_v8 = vpop.permute.xlu1 %230  ;;  %268 = vrot.lane.b32.xlu0 %v157_v45, %s2943_s25  ;;  %v3975_v45 = vld [vmem:[#allocation2 + $0x38] sm:$0xff] }
  0xbf   :  { %v2451_v25 = vmul.f32 %v5301_v18, %v2212_v24  ;;  %v1418_v40 = vmax.f32 %v1057_v58, 0.0  ;;  %v1058_v16 = vsub.f32 %v2893_v28, %v1044_v46  ;;  %v340_v21 = vsub.f32 %v2893_v28, %v326_v37  ;;  %v1747_v58 = vpop.permute.xlu0 %1746 }
  0xc0   :  { %v2168_v55 = vadd.f32 %v2129_v54, %v1372_v23  ;;  %v5302_v13 = vrot.slane %v3167_v63, %v3258_v47  ;;  %v5303_v9 = vrot.slane %v3196_v12, %v3258_v47  ;;  %v5304_v24 = vrot.slane %v3165_v62, %v3278_v0 }
  0xc1   :  { %v2490_v14 = vadd.f32 %v2451_v25, %v1694_v29  ;;  %v5305_v23 = vrot.slane %v3193_v11, %v3278_v0  ;;  %v5306_v31 = vsel %vm3233_vm2, %v3317_v7, 0.0  ;;  %v1097_v18 = vmul.f32 %v1058_v16, %v1058_v16 }
  0xc2   :  { %v2130_v34 = vmul.f32 %v5302_v13, %v1891_v35  ;;  %v2452_v41 = vmul.f32 %v5303_v9, %v2213_v33  ;;  %v1335_v3 = vmul.f32 %v5304_v24, %v1096_v42  ;;  %v2768_v54 = vadd.f32 %v2767_v38, %v2168_v55  ;;  %v158_v38 = vld [vmem:[#allocation2 + $0xe0] sm:$0xff]  ;;  %v3970_v55 = vpop.permute.xlu1 %1748 }
  0xc3   :  { %v1657_v29 = vmul.f32 %v5305_v23, %v1418_v40  ;;  %v2730_v27 = vadd.f32 %v5306_v31, %v2490_v14  ;;  %v1419_v25 = vmax.f32 %v1058_v16, 0.0  ;;  %v5307_v40 = vrot.slane %v3165_v62, %v3328_v5  ;;  %v951_v14 = vpop.permute.xlu0 %950  ;;  %270 = vrot.lane.b32.xlu1 %v158_v38, %s2943_s25  ;;  %1786 = vrot.lane.b32.xlu0 %v158_v38, %s2945_s7 }
  0xc4   :  { %v2169_v46 = vadd.f32 %v2130_v34, %v1373_v43  ;;  %v2491_v37 = vadd.f32 %v2452_v41, %v1695_v20  ;;  %v1374_v35 = vadd.f32 %v1335_v3, %v617_v15  ;;  %v5308_v9 = vrot.slane %v3193_v11, %v3328_v5 }
  0xc5   :  { %v1696_v33 = vadd.f32 %v1657_v29, %v900_v6  ;;  %v2818_v42 = vadd.f32 %v2817_v30, %v2730_v27  ;;  %v1336_v13 = vmul.f32 %v5307_v40, %v1097_v18  ;;  %v379_v7 = vmul.f32 %v340_v21, %v340_v21 }
  0xc6   :  { %v1658_v24 = vmul.f32 %v5308_v9, %v1419_v25  ;;  %v5309_v15 = vsel %vm3233_vm2, %v3338_v52, 0.0  ;;  %v2769_v43 = vadd.f32 %v2768_v54, %v2169_v46  ;;  %v662_v20 = vmax.f32 %v340_v21, 0.0  ;;  %v953_v40 = vpop.permute.xlu1 %952 }
  0xc7   :  { %v2731_v6 = vadd.f32 %v5309_v15, %v2491_v37  ;;  %v325_v30 = vsel %vm294_vm4, %v229_v36, %v3949_v8  ;;  %v5310_v16 = vrot.slane %v3142_v51, %v3328_v5  ;;  %v1839_v52 = vsel %vm1808_vm6, %v3904_v22, %v1747_v58  ;;  %v159_v22 = vld [vmem:[#allocation2 + $0xe8] sm:$0xff]  ;;  %v233_v9 = vpop.permute.xlu0 %232  ;;  %990 = vrot.lane.b32.xlu0 %v158_v38, %s2944_s26 }
  0xc8   :  { %v341_v41 = vsub.f32 %v3975_v45, %v325_v30  ;;  %v1838_v21 = vsel %vm1808_vm6, %v1747_v58, %v3970_v55  ;;  %v5311_v3 = vrot.slane %v3163_v61, %v3328_v5  ;;  %v1853_v29 = vsub.f32 %v2892_v19, %v1839_v52  ;;  %1788 = vrot.lane.b32.xlu1 %v159_v22, %s2945_s7 }
  0xc9   :  { %v618_v34 = vmul.f32 %v5310_v16, %v379_v7  ;;  %v2819_v36 = vadd.f32 %v2818_v42, %v2731_v6  ;;  %v1854_v31 = vsub.f32 %v2893_v28, %v1838_v21  ;;  %v1043_v25 = vsel %vm1012_vm5, %v949_v10, %v951_v14 }
  0xca   :  { %v901_v23 = vmul.f32 %v5311_v3, %v662_v20  ;;  %v380_v54 = vmul.f32 %v341_v41, %v341_v41  ;;  %v663_v18 = vmax.f32 %v341_v41, 0.0  ;;  %v1892_v58 = vmul.f32 %v1853_v29, %v1853_v29  ;;  %v2895_v3 = vld [vmem:[#allocation2 + $0x40] sm:$0xff] }
  0xcb   :  { %v1375_v27 = vadd.f32 %v1336_v13, %v618_v34  ;;  %v2214_v37 = vmax.f32 %v1853_v29, 0.0  ;;  %v1893_v42 = vmul.f32 %v1854_v31, %v1854_v31  ;;  %v5312_v19 = vrot.slane %v3142_v51, %v3341_v2  ;;  %272 = vrot.lane.b32.xlu0 %v159_v22, %s2943_s25 }
  0xcc   :  { %v1697_v46 = vadd.f32 %v1658_v24, %v901_v23  ;;  %v5313_v13 = vrot.slane %v3163_v61, %v3341_v2  ;;  %v2215_v15 = vmax.f32 %v1854_v31, 0.0  ;;  %v1059_v10 = vsub.f32 %v3975_v45, %v1043_v25  ;;  %v1751_v25 = vpop.permute.xlu0 %1750  ;;  %992 = vrot.lane.b32.xlu1 %v159_v22, %s2944_s26 }
  0xcd   :  { %v619_v28 = vmul.f32 %v5312_v19, %v380_v54  ;;  %v5314_v6 = vrot.slane %v3167_v63, %v3278_v0  ;;  %v5315_v20 = vrot.slane %v3196_v12, %v3278_v0  ;;  %v5316_v16 = vrot.slane %v3167_v63, %v3328_v5 }
  0xce   :  { %v902_v7 = vmul.f32 %v5313_v13, %v663_v18  ;;  %v1042_v34 = vsel %vm1012_vm5, %v951_v14, %v953_v40  ;;  %v5317_v61 = vrot.slane %v3196_v12, %v3328_v5  ;;  %v1098_v52 = vmul.f32 %v1059_v10, %v1059_v10  ;;  %v4017_v14 = vpop.permute.xlu1 %234 }
  0xcf   :  { %v2131_v24 = vmul.f32 %v5314_v6, %v1892_v58  ;;  %v2453_v30 = vmul.f32 %v5315_v20, %v2214_v37  ;;  %v2132_v51 = vmul.f32 %v5316_v16, %v1893_v42  ;;  %v1420_v21 = vmax.f32 %v1059_v10, 0.0 }
  0xd0   :  { %v2454_v41 = vmul.f32 %v5317_v61, %v2215_v15  ;;  %v1060_v23 = vsub.f32 %v2895_v3, %v1042_v34  ;;  %v324_v18 = vsel %vm294_vm4, %v3949_v8, %v233_v9  ;;  %v5318_v37 = vrot.slane %v3165_v62, %v3341_v2 }
  0xd1   :  { %v2170_v29 = vadd.f32 %v2131_v24, %v1374_v35  ;;  %v2492_v31 = vadd.f32 %v2453_v30, %v1696_v33  ;;  %v2171_v54 = vadd.f32 %v2132_v51, %v1375_v27  ;;  %v5319_v19 = vrot.slane %v3193_v11, %v3341_v2  ;;  %v5323_v30 = vld [vmem:[#allocation7_spill] sm:$0xff] }
  0xd2   :  { %v2493_v58 = vadd.f32 %v2454_v41, %v1697_v46  ;;  %v1337_v42 = vmul.f32 %v5318_v37, %v1098_v52  ;;  %v1099_v38 = vmul.f32 %v1060_v23, %v1060_v23  ;;  %v5320_v35 = vsel %vm3233_vm2, %v3374_v49, 0.0  ;;  %v160_v49 = vld [vmem:[#allocation2 + $0xf0] sm:$0xff]  ;;  %v4041_v61 = vpop.permute.xlu1 %1752  ;;  %v5325_v52 = vld [vmem:[#allocation6_spill] sm:$0xff] }
  0xd3   :  { %v1659_v13 = vmul.f32 %v5319_v19, %v1420_v21  ;;  %v2732_v33 = vadd.f32 %v5320_v35, %v2492_v31  ;;  %v2770_v27 = vadd.f32 %v2769_v43, %v2170_v29  ;;  %v1421_v8 = vmax.f32 %v1060_v23, 0.0  ;;  %v4055_v29 = vld [vmem:[#allocation2 + $0x48] sm:$0xff]  ;;  %274 = vrot.lane.b32.xlu1 %v160_v49, %s2943_s25  ;;  %1790 = vrot.lane.b32.xlu0 %v160_v49, %s2945_s7  ;;  %v161_v37 = vld [vmem:[#allocation2 + $0xf8] sm:$0xff] }
  0xd4   :  { %v342_v15 = vsub.f32 %v2895_v3, %v324_v18  ;;  %v5321_v62 = vsel %vm3233_vm2, %v3384_v59, 0.0  ;;  %v1376_v10 = vadd.f32 %v1337_v42, %v619_v28  ;;  %v5322_v11 = vrot.slane %v3356_v50, %v3152_v56  ;;  %v955_v59 = vpop.permute.xlu0 %954 }
  0xd5   :  { %v2733_v46 = vadd.f32 %v5321_v62, %v2493_v58  ;;  %v1698_v6 = vadd.f32 %v1659_v13, %v902_v7  ;;  %v2820_v20 = vadd.f32 %v2819_v36, %v2732_v33  ;;  %v2771_v43 = vadd.f32 %v2770_v27, %v2171_v54 }
  0xd6   :  { %v1338_v24 = vmul.f32 %v5322_v11, %v1099_v38  ;;  %v5324_v16 = vrot.slane %v5323_v30, %v3152_v56  ;;  %v381_v34 = vmul.f32 %v342_v15, %v342_v15  ;;  %v664_v41 = vmax.f32 %v342_v15, 0.0  ;;  %v957_v35 = vpop.permute.xlu1 %956 }
  0xd7   :  { %v323_v28 = vsel %vm294_vm4, %v233_v9, %v4017_v14  ;;  %v1837_v22 = vsel %vm1808_vm6, %v3970_v55, %v1751_v25  ;;  %v1836_v36 = vsel %vm1808_vm6, %v1751_v25, %v4041_v61  ;;  %v2821_v7 = vadd.f32 %v2820_v20, %v2733_v46  ;;  %v5327_v9 = vld [vmem:[#allocation9_spill] sm:$0xff]  ;;  %1792 = vrot.lane.b32.xlu1 %v161_v37, %s2945_s7 }
  0xd8   :  { %v1660_v51 = vmul.f32 %v5324_v16, %v1421_v8  ;;  %v5326_v21 = vrot.slane %v5325_v52, %v3152_v56  ;;  %v343_v31 = vsub.f32 %v4055_v29, %v323_v28  ;;  %v1855_v54 = vsub.f32 %v3975_v45, %v1837_v22  ;;  %v237_v33 = vpop.permute.xlu0 %236  ;;  %994 = vrot.lane.b32.xlu0 %v160_v49, %s2944_s26 }
  0xd9   :  { %v5328_v55 = vrot.slane %v5327_v9, %v3152_v56  ;;  %v1856_v58 = vsub.f32 %v2895_v3, %v1836_v36  ;;  %v1041_v25 = vsel %vm1012_vm5, %v953_v40, %v955_v59  ;;  %v2708_v42 = vsel %vm3233_vm2, %v3884_v26, 0.0  ;;  %v5335_v36 = vld [vmem:[#allocation11_spill] sm:$0xff] }
  0xda   :  { %v620_v23 = vmul.f32 %v5326_v21, %v381_v34  ;;  %v382_v13 = vmul.f32 %v343_v31, %v343_v31  ;;  %v665_v45 = vmax.f32 %v343_v31, 0.0  ;;  %v1894_v38 = vmul.f32 %v1855_v54, %v1855_v54 }
  0xdb   :  { %v903_v18 = vmul.f32 %v5328_v55, %v664_v41  ;;  %v2216_v8 = vmax.f32 %v1855_v54, 0.0  ;;  %v1895_v15 = vmul.f32 %v1856_v58, %v1856_v58  ;;  %v2217_v3 = vmax.f32 %v1856_v58, 0.0  ;;  %v5333_v41 = vld [vmem:[#allocation8_spill] sm:$0xff]  ;;  %996 = vrot.lane.b32.xlu1 %v161_v37, %s2944_s26 }
  0xdc   :  { %v1377_v19 = vadd.f32 %v1338_v24, %v620_v23  ;;  %v5329_v40 = vrot.slane %v5325_v52, %v3160_v60  ;;  %v5330_v46 = vrot.slane %v5327_v9, %v3160_v60  ;;  %v5331_v24 = vrot.slane %v3167_v63, %v3341_v2  ;;  %276 = vrot.lane.b32.xlu0 %v161_v37, %s2943_s25 }
  0xdd   :  { %v1699_v27 = vadd.f32 %v1660_v51, %v903_v18  ;;  %v1061_v16 = vsub.f32 %v4055_v29, %v1041_v25  ;;  %v5332_v51 = vrot.slane %v3196_v12, %v3341_v2  ;;  %v5334_v28 = vrot.slane %v5333_v41, %v3152_v56  ;;  %v2897_v18 = vld [vmem:[#allocation2 + $0x50] sm:$0xff]  ;;  %v4092_v12 = vpop.permute.xlu1 %238  ;;  %v1755_v25 = vpop.permute.xlu0 %1754 }
  0xde   :  { %v621_v62 = vmul.f32 %v5329_v40, %v382_v13  ;;  %v904_v11 = vmul.f32 %v5330_v46, %v665_v45  ;;  %v2133_v20 = vmul.f32 %v5331_v24, %v1894_v38  ;;  %v5336_v21 = vrot.slane %v5335_v36, %v3152_v56 }
  0xdf   :  { %v2455_v34 = vmul.f32 %v5332_v51, %v2216_v8  ;;  %v2134_v22 = vmul.f32 %v5334_v28, %v1895_v15  ;;  %v1040_v63 = vsel %vm1012_vm5, %v955_v59, %v957_v35  ;;  %v1100_v54 = vmul.f32 %v1061_v16, %v1061_v16 }
  0xe0   :  { %v2456_v23 = vmul.f32 %v5336_v21, %v2217_v3  ;;  %v2172_v31 = vadd.f32 %v2133_v20, %v1376_v10  ;;  %v1422_v55 = vmax.f32 %v1061_v16, 0.0  ;;  %v1062_v58 = vsub.f32 %v2897_v18, %v1040_v63  ;;  %v162_v16 = vld [vmem:[#allocation2 + $0x100] sm:$0xff] }
  0xe1   :  { %v2494_v13 = vadd.f32 %v2455_v34, %v1698_v6  ;;  %v2173_v45 = vadd.f32 %v2134_v22, %v1377_v19  ;;  %v322_v8 = vsel %vm294_vm4, %v4017_v14, %v237_v33  ;;  %v5337_v59 = vrot.slane %v3356_v50, %v3160_v60  ;;  %v5339_v6 = vld [vmem:[#allocation10_spill] sm:$0xff]  ;;  %v5341_v14 = vld [vmem:[#allocation12_spill] sm:$0xff]  ;;  %v959_v63 = vpop.permute.xlu0 %958  ;;  %278 = vrot.lane.b32.xlu1 %v162_v16, %s2943_s25 }
  0xe2   :  { %v2495_v38 = vadd.f32 %v2456_v23, %v1699_v27  ;;  %v2772_v15 = vadd.f32 %v2771_v43, %v2172_v31  ;;  %v5338_v10 = vrot.slane %v5323_v30, %v3160_v60  ;;  %v1101_v40 = vmul.f32 %v1062_v58, %v1062_v58  ;;  %v4118_v23 = vpop.permute.xlu1 %1756  ;;  %1794 = vrot.lane.b32.xlu0 %v162_v16, %s2945_s7 }
  0xe3   :  { %v1339_v49 = vmul.f32 %v5337_v59, %v1100_v54  ;;  %v5340_v19 = vsel %vm3233_vm2, %v5339_v6, 0.0  ;;  %v5342_v43 = vsel %vm3233_vm2, %v5341_v14, 0.0  ;;  %v1423_v24 = vmax.f32 %v1062_v58, 0.0  ;;  %v4141_v59 = vld [vmem:[#allocation2 + $0x58] sm:$0xff]  ;;  %v5347_v6 = vld [vmem:[#allocation20_spill] sm:$0xff] }
  0xe4   :  { %v1661_v3 = vmul.f32 %v5338_v10, %v1422_v55  ;;  %v2734_v27 = vadd.f32 %v5340_v19, %v2494_v13  ;;  %v2735_v46 = vadd.f32 %v5342_v43, %v2495_v38  ;;  %v344_v20 = vsub.f32 %v2897_v18, %v322_v8 }
  0xe5   :  { %v4113_v51 = vadd.f32 %v2772_v15, %v2173_v45  ;;  %v1378_v34 = vadd.f32 %v1339_v49, %v621_v62  ;;  %v5343_v22 = vrot.slane %v3356_v50, %v3180_v4  ;;  %v5344_v54 = vrot.slane %v5323_v30, %v3180_v4 }
  0xe6   :  { %v1700_v28 = vadd.f32 %v1661_v3, %v904_v11  ;;  %v2822_v31 = vadd.f32 %v2821_v7, %v2734_v27  ;;  %v383_v58 = vmul.f32 %v344_v20, %v344_v20  ;;  %v666_v13 = vmax.f32 %v344_v20, 0.0  ;;  %v4147_v3 = vpop.permute.xlu1 %960  ;;  %998 = vrot.lane.b32.xlu0 %v162_v16, %s2944_s26 }
  0xe7   :  { %v1340_v21 = vmul.f32 %v5343_v22, %v1101_v40  ;;  %v1662_v55 = vmul.f32 %v5344_v54, %v1423_v24  ;;  %v321_v37 = vsel %vm294_vm4, %v237_v33, %v4092_v12  ;;  %v1835_v62 = vsel %vm1808_vm6, %v4041_v61, %v1755_v25  ;;  %v241_v40 = vpop.permute.xlu0 %240 }
  0xe8   :  { %v1834_v11 = vsel %vm1808_vm6, %v1755_v25, %v4118_v23  ;;  %v1039_v7 = vsel %vm1012_vm5, %v957_v35, %v959_v63  ;;  %v2823_v45 = vadd.f32 %v2822_v31, %v2735_v46  ;;  %v5345_v38 = vrot.slane %v5325_v52, %v3180_v4  ;;  %v163_v25 = vld [vmem:[#allocation2 + $0x108] sm:$0xff] }
  0xe9   :  { %v5346_v33 = vrot.slane %v5327_v9, %v3180_v4  ;;  %v345_v61 = vsub.f32 %v4141_v59, %v321_v37  ;;  %v1857_v35 = vsub.f32 %v4055_v29, %v1835_v62  ;;  %v1858_v49 = vsub.f32 %v2897_v18, %v1834_v11  ;;  %1796 = vrot.lane.b32.xlu1 %v163_v25, %s2945_s7 }
  0xea   :  { %v622_v8 = vmul.f32 %v5345_v38, %v383_v58  ;;  %v1063_v10 = vsub.f32 %v4141_v59, %v1039_v7  ;;  %v1544_v19 = vrot.slane %v5347_v6, %v3278_v0  ;;  %v5348_v29 = vrot.slane %v5325_v52, %v3213_v17  ;;  %280 = vrot.lane.b32.xlu0 %v163_v25, %s2943_s25 }
  0xeb   :  { %v905_v15 = vmul.f32 %v5346_v33, %v666_v13  ;;  %v384_v43 = vmul.f32 %v345_v61, %v345_v61  ;;  %v667_v46 = vmax.f32 %v345_v61, 0.0  ;;  %v1896_v24 = vmul.f32 %v1857_v35, %v1857_v35  ;;  %v1759_v61 = vpop.permute.xlu0 %1758 }
  0xec   :  { %v1379_v27 = vadd.f32 %v1340_v21, %v622_v8  ;;  %v2218_v20 = vmax.f32 %v1857_v35, 0.0  ;;  %v1897_v22 = vmul.f32 %v1858_v49, %v1858_v49  ;;  %v2219_v31 = vmax.f32 %v1858_v49, 0.0 }
  0xed   :  { %v1701_v14 = vadd.f32 %v1662_v55, %v905_v15  ;;  %v623_v18 = vmul.f32 %v5348_v29, %v384_v43  ;;  %v5349_v54 = vrot.slane %v5327_v9, %v3213_v17  ;;  %v1102_v13 = vmul.f32 %v1063_v10, %v1063_v10  ;;  %v243_v15 = vpop.permute.xlu1 %242  ;;  %1000 = vrot.lane.b32.xlu1 %v163_v25, %s2944_s26 }
  0xee   :  { %v1424_v37 = vmax.f32 %v1063_v10, 0.0  ;;  %v5350_v21 = vrot.slane %v5333_v41, %v3160_v60  ;;  %v5351_v62 = vrot.slane %v5335_v36, %v3160_v60  ;;  %v5352_v7 = vrot.slane %v5333_v41, %v3180_v4 }
  0xef   :  { %v906_v58 = vmul.f32 %v5349_v54, %v667_v46  ;;  %v5353_v8 = vrot.slane %v5335_v36, %v3180_v4  ;;  %v5354_v16 = vrot.slane %v3356_v50, %v3213_v17  ;;  %v5355_v49 = vrot.slane %v5323_v30, %v3213_v17 }
  0xf0   :  { %v2135_v55 = vmul.f32 %v5350_v21, %v1896_v24  ;;  %v2457_v11 = vmul.f32 %v5351_v62, %v2218_v20  ;;  %v2136_v38 = vmul.f32 %v5352_v7, %v1897_v22  ;;  %v1038_v43 = vsel %vm1012_vm5, %v959_v63, %v4147_v3  ;;  %v5356_v63 = vld [vmem:[#allocation13_spill] sm:$0xff] }
  0xf1   :  { %v2458_v33 = vmul.f32 %v5353_v8, %v2219_v31  ;;  %v1341_v35 = vmul.f32 %v5354_v16, %v1102_v13  ;;  %v1663_v10 = vmul.f32 %v5355_v49, %v1424_v37  ;;  %v320_v46 = vsel %vm294_vm4, %v4092_v12, %v241_v40  ;;  %v2899_v13 = vld [vmem:[#allocation2 + $0x60] sm:$0xff]  ;;  %v164_v37 = vld [vmem:[#allocation2 + $0x110] sm:$0xff] }
  0xf2   :  { %v2174_v24 = vadd.f32 %v2135_v55, %v1378_v34  ;;  %v2496_v20 = vadd.f32 %v2457_v11, %v1700_v28  ;;  %v2175_v22 = vadd.f32 %v2136_v38, %v1379_v27  ;;  %v1064_v21 = vsub.f32 %v2899_v13, %v1038_v43  ;;  %v5358_v34 = vld [vmem:[#allocation14_spill] sm:$0xff]  ;;  %282 = vrot.lane.b32.xlu1 %v164_v37, %s2943_s25 }
  0xf3   :  { %v2497_v31 = vadd.f32 %v2458_v33, %v1701_v14  ;;  %v1380_v29 = vadd.f32 %v1341_v35, %v623_v18  ;;  %v1702_v54 = vadd.f32 %v1663_v10, %v906_v58  ;;  %v346_v62 = vsub.f32 %v2899_v13, %v320_v46  ;;  %v4196_v18 = vpop.permute.xlu1 %1760  ;;  %v963_v58 = vpop.permute.xlu0 %962  ;;  %v4198_v35 = vld [vmem:[#allocation2 + $0x68] sm:$0xff]  ;;  %1798 = vrot.lane.b32.xlu0 %v164_v37, %s2945_s7 }
  0xf4   :  { %v5357_v7 = vsel %vm3233_vm2, %v5356_v63, 0.0  ;;  %v2774_v12 = vadd.f32 %v4113_v51, %v2174_v24  ;;  %v5359_v28 = vsel %vm3233_vm2, %v5358_v34, 0.0  ;;  %v319_v14 = vsel %vm294_vm4, %v241_v40, %v243_v15 }
  0xf5   :  { %v2736_v8 = vadd.f32 %v5357_v7, %v2496_v20  ;;  %v2737_v27 = vadd.f32 %v5359_v28, %v2497_v31  ;;  %v1103_v25 = vmul.f32 %v1064_v21, %v1064_v21  ;;  %v1425_v55 = vmax.f32 %v1064_v21, 0.0 }
  0xf6   :  { %v385_v11 = vmul.f32 %v346_v62, %v346_v62  ;;  %v668_v38 = vmax.f32 %v346_v62, 0.0  ;;  %v2775_v16 = vadd.f32 %v2774_v12, %v2175_v22  ;;  %v347_v51 = vsub.f32 %v4198_v35, %v319_v14 }
  0xf7   :  { %v2824_v33 = vadd.f32 %v2823_v45, %v2736_v8  ;;  %v1833_v49 = vsel %vm1808_vm6, %v4118_v23, %v1759_v61  ;;  %v5360_v40 = vrot.slane %v3356_v50, %v3258_v47  ;;  %v5361_v43 = vrot.slane %v5323_v30, %v3258_v47  ;;  %v165_v23 = vld [vmem:[#allocation2 + $0x118] sm:$0xff]  ;;  %v4219_v7 = vpop.permute.xlu1 %964  ;;  %v245_v8 = vpop.permute.xlu0 %244  ;;  %1002 = vrot.lane.b32.xlu0 %v164_v37, %s2944_s26 }
  0xf8   :  { %v5362_v45 = vrot.slane %v5325_v52, %v3258_v47  ;;  %v5363_v20 = vrot.slane %v5327_v9, %v3258_v47  ;;  %v386_v21 = vmul.f32 %v347_v51, %v347_v51  ;;  %v669_v62 = vmax.f32 %v347_v51, 0.0  ;;  %1800 = vrot.lane.b32.xlu1 %v165_v23, %s2945_s7 }
  0xf9   :  { %v1342_v10 = vmul.f32 %v5360_v40, %v1103_v25  ;;  %v1664_v46 = vmul.f32 %v5361_v43, %v1425_v55  ;;  %v2825_v31 = vadd.f32 %v2824_v33, %v2737_v27  ;;  %v1859_v63 = vsub.f32 %v4141_v59, %v1833_v49 }
  0xfa   :  { %v624_v24 = vmul.f32 %v5362_v45, %v385_v11  ;;  %v907_v22 = vmul.f32 %v5363_v20, %v668_v38  ;;  %v1832_v28 = vsel %vm1808_vm6, %v1759_v61, %v4196_v18  ;;  %v1037_v14 = vsel %vm1012_vm5, %v4147_v3, %v963_v58 }
  0xfb   :  { %v5364_v27 = vrot.slane %v5325_v52, %v3278_v0  ;;  %v5365_v59 = vrot.slane %v5327_v9, %v3278_v0  ;;  %v1898_v11 = vmul.f32 %v1859_v63, %v1859_v63  ;;  %v2220_v38 = vmax.f32 %v1859_v63, 0.0  ;;  %v1763_v20 = vpop.permute.xlu0 %1762  ;;  %284 = vrot.lane.b32.xlu0 %v165_v23, %s2943_s25 }
  0xfc   :  { %v1381_v12 = vadd.f32 %v1342_v10, %v624_v24  ;;  %v1703_v34 = vadd.f32 %v1664_v46, %v907_v22  ;;  %v1860_v33 = vsub.f32 %v2899_v13, %v1832_v28  ;;  %v1065_v51 = vsub.f32 %v4198_v35, %v1037_v14  ;;  %v2901_v13 = vld [vmem:[#allocation2 + $0x70] sm:$0xff]  ;;  %v4247_v24 = vpop.permute.xlu1 %246  ;;  %1004 = vrot.lane.b32.xlu1 %v165_v23, %s2944_s26 }
  0xfd   :  { %v625_v25 = vmul.f32 %v5364_v27, %v386_v21  ;;  %v908_v55 = vmul.f32 %v5365_v59, %v669_v62  ;;  %v1036_v61 = vsel %vm1012_vm5, %v963_v58, %v4219_v7  ;;  %v318_v3 = vsel %vm294_vm4, %v243_v15, %v245_v8 }
  0xfe   :  { %v5366_v49 = vrot.slane %v5333_v41, %v3213_v17  ;;  %v5367_v10 = vrot.slane %v5335_v36, %v3213_v17  ;;  %v1066_v46 = vsub.f32 %v2901_v13, %v1036_v61  ;;  %v348_v45 = vsub.f32 %v2901_v13, %v318_v3  ;;  %v5372_v61 = vld [vmem:[#allocation15_spill] sm:$0xff] }
  0xff   :  { %v1899_v58 = vmul.f32 %v1860_v33, %v1860_v33  ;;  %v2221_v22 = vmax.f32 %v1860_v33, 0.0  ;;  %v1104_v21 = vmul.f32 %v1065_v51, %v1065_v51  ;;  %v1426_v15 = vmax.f32 %v1065_v51, 0.0  ;;  %v166_v51 = vld [vmem:[#allocation2 + $0x120] sm:$0xff] }
 0x100   :  { %v2137_v40 = vmul.f32 %v5366_v49, %v1898_v11  ;;  %v2459_v43 = vmul.f32 %v5367_v10, %v2220_v38  ;;  %v1105_v63 = vmul.f32 %v1066_v46, %v1066_v46  ;;  %v1427_v28 = vmax.f32 %v1066_v46, 0.0  ;;  %286 = vrot.lane.b32.xlu1 %v166_v51, %s2943_s25  ;;  %1802 = vrot.lane.b32.xlu0 %v166_v51, %s2945_s7 }
 0x101   :  { %v5368_v14 = vrot.slane %v5333_v41, %v3258_v47  ;;  %v5369_v59 = vrot.slane %v5335_v36, %v3258_v47  ;;  %v5370_v38 = vrot.slane %v3356_v50, %v3278_v0  ;;  %v5373_v3 = vsel %vm3233_vm2, %v5372_v61, 0.0 }
 0x102   :  { %v2176_v62 = vadd.f32 %v2137_v40, %v1380_v29  ;;  %v2498_v37 = vadd.f32 %v2459_v43, %v1702_v54  ;;  %v5371_v29 = vrot.slane %v5323_v30, %v3278_v0  ;;  %v5374_v10 = vrot.slane %v3356_v50, %v3328_v5 }
 0x103   :  { %v2138_v27 = vmul.f32 %v5368_v14, %v1899_v58  ;;  %v2460_v11 = vmul.f32 %v5369_v59, %v2221_v22  ;;  %v1343_v33 = vmul.f32 %v5370_v38, %v1104_v21  ;;  %v5375_v46 = vrot.slane %v5323_v30, %v3328_v5  ;;  %v4273_v22 = vpop.permute.xlu1 %1764  ;;  %v967_v21 = vpop.permute.xlu0 %966 }
 0x104   :  { %v1665_v54 = vmul.f32 %v5371_v29, %v1426_v15  ;;  %v2738_v49 = vadd.f32 %v5373_v3, %v2498_v37  ;;  %v2776_v40 = vadd.f32 %v2775_v16, %v2176_v62  ;;  %v1344_v43 = vmul.f32 %v5374_v10, %v1105_v63  ;;  %v5376_v62 = vld [vmem:[#allocation16_spill] sm:$0xff]  ;;  %v4283_v3 = vld [vmem:[#allocation2 + $0x78] sm:$0xff]  ;;  %1006 = vrot.lane.b32.xlu0 %v166_v51, %s2944_s26 }
 0x105   :  { %v1666_v58 = vmul.f32 %v5375_v46, %v1427_v28  ;;  %v2177_v15 = vadd.f32 %v2138_v27, %v1381_v12  ;;  %v2499_v23 = vadd.f32 %v2460_v11, %v1703_v34  ;;  %v1382_v14 = vadd.f32 %v1343_v33, %v625_v25  ;;  %v167_v34 = vld [vmem:[#allocation2 + $0x128] sm:$0xff] }
 0x106   :  { %v1704_v59 = vadd.f32 %v1665_v54, %v908_v55  ;;  %v2826_v38 = vadd.f32 %v2825_v31, %v2738_v49  ;;  %v387_v29 = vmul.f32 %v348_v45, %v348_v45  ;;  %v670_v61 = vmax.f32 %v348_v45, 0.0  ;;  %1804 = vrot.lane.b32.xlu1 %v167_v34, %s2945_s7 }
 0x107   :  { %v317_v16 = vsel %vm294_vm4, %v245_v8, %v4247_v24  ;;  %v5377_v37 = vsel %vm3233_vm2, %v5376_v62, 0.0  ;;  %v2777_v28 = vadd.f32 %v2776_v40, %v2177_v15  ;;  %v1831_v31 = vsel %vm1808_vm6, %v4196_v18, %v1763_v20  ;;  %v4300_v33 = vpop.permute.xlu1 %968  ;;  %v249_v18 = vpop.permute.xlu0 %248 }
 0x108   :  { %v2739_v63 = vadd.f32 %v5377_v37, %v2499_v23  ;;  %v349_v12 = vsub.f32 %v4283_v3, %v317_v16  ;;  %v5378_v8 = vrot.slane %v5325_v52, %v3328_v5  ;;  %v5379_v55 = vrot.slane %v5327_v9, %v3328_v5  ;;  %288 = vrot.lane.b32.xlu0 %v167_v34, %s2943_s25 }
 0x109   :  { %v1861_v27 = vsub.f32 %v4198_v35, %v1831_v31  ;;  %v1830_v11 = vsel %vm1808_vm6, %v1763_v20, %v4273_v22  ;;  %v5380_v35 = vrot.slane %v5325_v52, %v3341_v2  ;;  %v5381_v20 = vrot.slane %v5327_v9, %v3341_v2 }
 0x10a   :  { %v626_v25 = vmul.f32 %v5378_v8, %v387_v29  ;;  %v909_v45 = vmul.f32 %v5379_v55, %v670_v61  ;;  %v2827_v54 = vadd.f32 %v2826_v38, %v2739_v63  ;;  %v388_v49 = vmul.f32 %v349_v12, %v349_v12  ;;  %1008 = vrot.lane.b32.xlu1 %v167_v34, %s2944_s26 }
 0x10b   :  { %v671_v40 = vmax.f32 %v349_v12, 0.0  ;;  %v1862_v10 = vsub.f32 %v2901_v13, %v1830_v11  ;;  %v1900_v23 = vmul.f32 %v1861_v27, %v1861_v27  ;;  %v2222_v29 = vmax.f32 %v1861_v27, 0.0  ;;  %v4322_v63 = vpop.permute.xlu1 %250  ;;  %v1767_v12 = vpop.permute.xlu0 %1766 }
 0x10c   :  { %v1383_v46 = vadd.f32 %v1344_v43, %v626_v25  ;;  %v1705_v15 = vadd.f32 %v1666_v58, %v909_v45  ;;  %v627_v61 = vmul.f32 %v5380_v35, %v388_v49  ;;  %v5382_v13 = vrot.slane %v5333_v41, %v3278_v0  ;;  %v2903_v45 = vld [vmem:[#allocation2 + $0x80] sm:$0xff]  ;;  %v168_v35 = vld [vmem:[#allocation2 + $0x130] sm:$0xff] }
 0x10d   :  { %v910_v16 = vmul.f32 %v5381_v20, %v671_v40  ;;  %v1901_v62 = vmul.f32 %v1862_v10, %v1862_v10  ;;  %v2223_v37 = vmax.f32 %v1862_v10, 0.0  ;;  %v5383_v58 = vrot.slane %v5335_v36, %v3278_v0  ;;  %1806 = vrot.lane.b32.xlu0 %v168_v35, %s2945_s7 }
 0x10e   :  { %v2139_v43 = vmul.f32 %v5382_v13, %v1900_v23  ;;  %v1035_v52 = vsel %vm1012_vm5, %v4219_v7, %v967_v21  ;;  %v1034_v9 = vsel %vm1012_vm5, %v967_v21, %v4300_v33  ;;  %v5384_v51 = vrot.slane %v5333_v41, %v3328_v5  ;;  %290 = vrot.lane.b32.xlu1 %v168_v35, %s2943_s25 }
 0x10f   :  { %v2461_v38 = vmul.f32 %v5383_v58, %v2222_v29  ;;  %v5385_v8 = vrot.slane %v5335_v36, %v3328_v5  ;;  %v1067_v55 = vsub.f32 %v4283_v3, %v1035_v52  ;;  %v1068_v27 = vsub.f32 %v2903_v45, %v1034_v9  ;;  %v4343_v13 = vpop.permute.xlu1 %1768 }
 0x110   :  { %v2140_v31 = vmul.f32 %v5384_v51, %v1901_v62  ;;  %v2178_v7 = vadd.f32 %v2139_v43, %v1382_v14  ;;  %v316_v21 = vsel %vm294_vm4, %v4247_v24, %v249_v18  ;;  %v315_v49 = vsel %vm294_vm4, %v249_v18, %v4322_v63  ;;  %v5386_v14 = vld [vmem:[#allocation18_spill] sm:$0xff]  ;;  %v971_v18 = vpop.permute.xlu0 %970 }
 0x111   :  { %v2462_v25 = vmul.f32 %v5385_v8, %v2223_v37  ;;  %v2500_v11 = vadd.f32 %v2461_v38, %v1704_v59  ;;  %v1106_v23 = vmul.f32 %v1067_v55, %v1067_v55  ;;  %v1428_v29 = vmax.f32 %v1067_v55, 0.0  ;;  %1010 = vrot.lane.b32.xlu0 %v168_v35, %s2944_s26 }
 0x112   :  { %v2179_v40 = vadd.f32 %v2140_v31, %v1383_v46  ;;  %v5387_v59 = vsel %vm3233_vm2, %v5386_v14, 0.0  ;;  %v2778_v62 = vadd.f32 %v2777_v28, %v2178_v7  ;;  %v1107_v24 = vmul.f32 %v1068_v27, %v1068_v27  ;;  %v5388_v46 = vld [vmem:[#allocation19_spill] sm:$0xff] }
 0x113   :  { %v2501_v10 = vadd.f32 %v2462_v25, %v1705_v15  ;;  %v2740_v20 = vadd.f32 %v5387_v59, %v2500_v11  ;;  %v1429_v37 = vmax.f32 %v1068_v27, 0.0  ;;  %v5389_v15 = vsel %vm3233_vm2, %v5388_v46, 0.0  ;;  %v5396_v59 = vld [vmem:[#allocation21_spill] sm:$0xff] }
 0x114   :  { %v5390_v34 = vrot.slane %v3356_v50, %v3341_v2  ;;  %v5391_v38 = vrot.slane %v5323_v30, %v3341_v2  ;;  %v350_v9 = vsub.f32 %v2903_v45, %v316_v21  ;;  %v2779_v51 = vadd.f32 %v2778_v62, %v2179_v40  ;;  %v4363_v21 = vld [vmem:[#allocation2 + $0x88] sm:$0xff] }
 0x115   :  { %v2741_v43 = vadd.f32 %v5389_v15, %v2501_v10  ;;  %v2828_v28 = vadd.f32 %v2827_v54, %v2740_v20  ;;  %v5392_v31 = vrot.slane %v3559_v53, %v3152_v56  ;;  %v5393_v25 = vrot.slane %v5347_v6, %v3152_v56  ;;  %v2905_v15 = vld [vmem:[#allocation2] sm:$0xff] }
 0x116   :  { %v1345_v58 = vmul.f32 %v5390_v34, %v1106_v23  ;;  %v1667_v52 = vmul.f32 %v5391_v38, %v1428_v29  ;;  %v389_v7 = vmul.f32 %v350_v9, %v350_v9  ;;  %v672_v11 = vmax.f32 %v350_v9, 0.0  ;;  %v4372_v23 = vpop.permute.xlu1 %972  ;;  %1730 = vrot.lane.b32.xlu1 %v2905_v15, %s2945_s7 }
 0x117   :  { %v1346_v8 = vmul.f32 %v5392_v31, %v1107_v24  ;;  %v1668_v55 = vmul.f32 %v5393_v25, %v1429_v37  ;;  %v2829_v30 = vadd.f32 %v2828_v28, %v2741_v43  ;;  %v351_v54 = vsub.f32 %v4363_v21, %v315_v49 }
 0x118   :  { %v1384_v27 = vadd.f32 %v1345_v58, %v627_v61  ;;  %v1706_v50 = vadd.f32 %v1667_v52, %v910_v16  ;;  %v1829_v40 = vsel %vm1808_vm6, %v4273_v22, %v1767_v12  ;;  %v1828_v10 = vsel %vm1808_vm6, %v1767_v12, %v4343_v13  ;;  %v253_v61 = vpop.permute.xlu0 %252  ;;  %v5394_v16 = vld [vmem:[#allocation17_spill] sm:$0xff] }
 0x119   :  { %v5395_v29 = vrot.slane %v5394_v16, %v3152_v56  ;;  %v5397_v20 = vrot.slane %v5396_v59, %v3152_v56  ;;  %v1863_v49 = vsub.f32 %v4283_v3, %v1829_v40  ;;  %v1864_v24 = vsub.f32 %v2903_v45, %v1828_v10 }
 0x11a   :  { %v390_v37 = vmul.f32 %v351_v54, %v351_v54  ;;  %v673_v22 = vmax.f32 %v351_v54, 0.0  ;;  %v1033_v12 = vsel %vm1012_vm5, %v4300_v33, %v971_v18  ;;  %v1032_v46 = vsel %vm1012_vm5, %v971_v18, %v4372_v23  ;;  %v4395_v18 = vpop.permute.xlu1 %254 }
 0x11b   :  { %v628_v14 = vmul.f32 %v5395_v29, %v389_v7  ;;  %v911_v62 = vmul.f32 %v5397_v20, %v672_v11  ;;  %v1902_v58 = vmul.f32 %v1863_v49, %v1863_v49  ;;  %v2224_v38 = vmax.f32 %v1863_v49, 0.0  ;;  %v2906_v11 = vld [vmem:[#allocation2 + $0x90] sm:$0xff] }
 0x11c   :  { %v5398_v3 = vrot.slane %v5394_v16, %v3160_v60  ;;  %v5399_v33 = vrot.slane %v5396_v59, %v3160_v60  ;;  %v1903_v9 = vmul.f32 %v1864_v24, %v1864_v24  ;;  %v2225_v28 = vmax.f32 %v1864_v24, 0.0  ;;  %v1771_v31 = vpop.permute.xlu0 %1770 }
 0x11d   :  { %v1385_v43 = vadd.f32 %v1346_v8, %v628_v14  ;;  %v1707_v34 = vadd.f32 %v1668_v55, %v911_v62  ;;  %v5400_v8 = vrot.slane %v5333_v41, %v3341_v2  ;;  %v5401_v35 = vrot.slane %v5335_v36, %v3341_v2 }
 0x11e   :  { %v629_v45 = vmul.f32 %v5398_v3, %v390_v37  ;;  %v912_v52 = vmul.f32 %v5399_v33, %v673_v22  ;;  %v1069_v7 = vsub.f32 %v4363_v21, %v1033_v12  ;;  %v1070_v54 = vsub.f32 %v2906_v11, %v1032_v46  ;;  %v2907_v37 = vld [vmem:[#allocation2 + $0x8] sm:$0xff] }
 0x11f   :  { %v2141_v25 = vmul.f32 %v5400_v8, %v1902_v58  ;;  %v2463_v55 = vmul.f32 %v5401_v35, %v2224_v38  ;;  %v5402_v40 = vrot.slane %v3598_v44, %v3152_v56  ;;  %v5403_v29 = vrot.slane %v3637_v57, %v3152_v56  ;;  %1732 = vrot.lane.b32.xlu0 %v2907_v37, %s2945_s7  ;;  %v4417_v58 = vpop.permute.xlu1 %1772 }
 0x120   :  { %v314_v41 = vsel %vm294_vm4, %v4322_v63, %v253_v61  ;;  %v313_v36 = vsel %vm294_vm4, %v253_v61, %v4395_v18  ;;  %v1108_v49 = vmul.f32 %v1069_v7, %v1069_v7  ;;  %v1430_v24 = vmax.f32 %v1069_v7, 0.0  ;;  %v975_v38 = vpop.permute.xlu0 %974  ;;  %v5404_v63 = vld [vmem:[#allocation22_spill] sm:$0xff] }
 0x121   :  { %v2142_v10 = vmul.f32 %v5402_v40, %v1903_v9  ;;  %v2464_v14 = vmul.f32 %v5403_v29, %v2225_v28  ;;  %v2180_v20 = vadd.f32 %v2141_v25, %v1384_v27  ;;  %v2502_v62 = vadd.f32 %v2463_v55, %v1706_v50 }
 0x122   :  { %v1109_v46 = vmul.f32 %v1070_v54, %v1070_v54  ;;  %v1431_v15 = vmax.f32 %v1070_v54, 0.0  ;;  %v5405_v3 = vsel %vm3233_vm2, %v5404_v63, 0.0  ;;  %v5406_v27 = vrot.slane %v3559_v53, %v3160_v60 }
 0x123   :  { %v2181_v22 = vadd.f32 %v2142_v10, %v1385_v43  ;;  %v2503_v12 = vadd.f32 %v2464_v14, %v1707_v34  ;;  %v2742_v33 = vadd.f32 %v5405_v3, %v2502_v62  ;;  %v2780_v61 = vadd.f32 %v2779_v51, %v2180_v20  ;;  %v5408_v34 = vld [vmem:[#allocation24_spill] sm:$0xff]  ;;  %v4439_v62 = vld [vmem:[#allocation2 + $0x98] sm:$0xff]  ;;  %v4445_v37 = vpop.permute.xlu1 %976 }
 0x124   :  { %v1347_v50 = vmul.f32 %v5406_v27, %v1108_v49  ;;  %v5407_v9 = vrot.slane %v5347_v6, %v3160_v60  ;;  %v5409_v28 = vsel %vm3233_vm2, %v5408_v34, 0.0  ;;  %v5410_v25 = vrot.slane %v3559_v53, %v3180_v4 }
 0x125   :  { %v2743_v8 = vadd.f32 %v5409_v28, %v2503_v12  ;;  %v5411_v51 = vrot.slane %v5347_v6, %v3180_v4  ;;  %v352_v7 = vsub.f32 %v2906_v11, %v314_v41  ;;  %v2830_v54 = vadd.f32 %v2829_v30, %v2742_v33 }
 0x126   :  { %v1669_v43 = vmul.f32 %v5407_v9, %v1430_v24  ;;  %v1348_v35 = vmul.f32 %v5410_v25, %v1109_v46  ;;  %v2781_v40 = vadd.f32 %v2780_v61, %v2181_v22  ;;  %v1386_v10 = vadd.f32 %v1347_v50, %v629_v45 }
 0x127   :  { %v1670_v55 = vmul.f32 %v5411_v51, %v1431_v15  ;;  %v391_v14 = vmul.f32 %v352_v7, %v352_v7  ;;  %v674_v20 = vmax.f32 %v352_v7, 0.0  ;;  %v353_v49 = vsub.f32 %v4439_v62, %v313_v36  ;;  %v4467_v34 = vpop.permute.xlu1 %258 }
 0x128   :  { %v1708_v29 = vadd.f32 %v1669_v43, %v912_v52  ;;  %v1827_v24 = vsel %vm1808_vm6, %v4343_v13, %v1771_v31  ;;  %v2831_v12 = vadd.f32 %v2830_v54, %v2743_v8  ;;  %v1826_v30 = vsel %vm1808_vm6, %v1771_v31, %v4417_v58  ;;  %v257_v52 = vpop.permute.xlu0 %256 }
 0x129   :  { %v1865_v46 = vsub.f32 %v4363_v21, %v1827_v24  ;;  %v1031_v45 = vsel %vm1012_vm5, %v4372_v23, %v975_v38  ;;  %v5412_v41 = vrot.slane %v5394_v16, %v3180_v4  ;;  %v5413_v13 = vrot.slane %v5396_v59, %v3180_v4 }
 0x12a   :  { %v392_v15 = vmul.f32 %v353_v49, %v353_v49  ;;  %v675_v63 = vmax.f32 %v353_v49, 0.0  ;;  %v1866_v33 = vsub.f32 %v2906_v11, %v1826_v30  ;;  %v1071_v31 = vsub.f32 %v4439_v62, %v1031_v45 }
 0x12b   :  { %v630_v36 = vmul.f32 %v5412_v41, %v391_v14  ;;  %v913_v22 = vmul.f32 %v5413_v13, %v674_v20  ;;  %v1904_v21 = vmul.f32 %v1865_v46, %v1865_v46  ;;  %v2226_v3 = vmax.f32 %v1865_v46, 0.0 }
 0x12c   :  { %v5414_v23 = vrot.slane %v5394_v16, %v3213_v17  ;;  %v5415_v9 = vrot.slane %v5396_v59, %v3213_v17  ;;  %v5416_v28 = vrot.slane %v3598_v44, %v3160_v60  ;;  %v5417_v11 = vrot.slane %v3637_v57, %v3160_v60 }
 0x12d   :  { %v1387_v61 = vadd.f32 %v1348_v35, %v630_v36  ;;  %v1709_v27 = vadd.f32 %v1670_v55, %v913_v22  ;;  %v1905_v35 = vmul.f32 %v1866_v33, %v1866_v33  ;;  %v2227_v51 = vmax.f32 %v1866_v33, 0.0  ;;  %v1775_v55 = vpop.permute.xlu0 %1774 }
 0x12e   :  { %v631_v50 = vmul.f32 %v5414_v23, %v392_v15  ;;  %v914_v43 = vmul.f32 %v5415_v9, %v675_v63  ;;  %v2143_v8 = vmul.f32 %v5416_v28, %v1904_v21  ;;  %v2465_v25 = vmul.f32 %v5417_v11, %v2226_v3  ;;  %v2909_v15 = vld [vmem:[#allocation2 + $0xa0] sm:$0xff]  ;;  %v4497_v23 = vpop.permute.xlu1 %1776 }
 0x12f   :  { %v1110_v7 = vmul.f32 %v1071_v31, %v1071_v31  ;;  %v1432_v54 = vmax.f32 %v1071_v31, 0.0  ;;  %v1030_v14 = vsel %vm1012_vm5, %v975_v38, %v4445_v37  ;;  %v312_v20 = vsel %vm294_vm4, %v4395_v18, %v257_v52 }
 0x130   :  { %v2182_v49 = vadd.f32 %v2143_v8, %v1386_v10  ;;  %v2504_v24 = vadd.f32 %v2465_v25, %v1708_v29  ;;  %v5418_v46 = vrot.slane %v3598_v44, %v3180_v4  ;;  %v5419_v45 = vrot.slane %v3637_v57, %v3180_v4  ;;  %v5422_v29 = vld [vmem:[#allocation25_spill] sm:$0xff] }
 0x131   :  { %v5420_v36 = vrot.slane %v3559_v53, %v3213_v17  ;;  %v5421_v38 = vrot.slane %v5347_v6, %v3213_v17  ;;  %v1072_v18 = vsub.f32 %v2909_v15, %v1030_v14  ;;  %v354_v10 = vsub.f32 %v2909_v15, %v312_v20  ;;  %v979_v20 = vpop.permute.xlu0 %978 }
 0x132   :  { %v2144_v30 = vmul.f32 %v5418_v46, %v1905_v35  ;;  %v2466_v41 = vmul.f32 %v5419_v45, %v2227_v51  ;;  %v5423_v63 = vsel %vm3233_vm2, %v5422_v29, 0.0  ;;  %v2782_v3 = vadd.f32 %v2781_v40, %v2182_v49  ;;  %v5424_v35 = vld [vmem:[#allocation27_spill] sm:$0xff] }
 0x133   :  { %v1349_v13 = vmul.f32 %v5420_v36, %v1110_v7  ;;  %v1671_v22 = vmul.f32 %v5421_v38, %v1432_v54  ;;  %v2744_v21 = vadd.f32 %v5423_v63, %v2504_v24  ;;  %v1111_v8 = vmul.f32 %v1072_v18, %v1072_v18 }
 0x134   :  { %v2183_v33 = vadd.f32 %v2144_v30, %v1387_v61  ;;  %v2505_v31 = vadd.f32 %v2466_v41, %v1709_v27  ;;  %v1433_v11 = vmax.f32 %v1072_v18, 0.0  ;;  %v5425_v51 = vsel %vm3233_vm2, %v5424_v35, 0.0  ;;  %v4515_v30 = vld [vmem:[#allocation2 + $0xa8] sm:$0xff] }
 0x135   :  { %v1388_v9 = vadd.f32 %v1349_v13, %v631_v50  ;;  %v1710_v28 = vadd.f32 %v1671_v22, %v914_v43  ;;  %v2832_v25 = vadd.f32 %v2831_v12, %v2744_v21  ;;  %v393_v14 = vmul.f32 %v354_v10, %v354_v10  ;;  %v4531_v21 = vpop.permute.xlu1 %980  ;;  %v261_v35 = vpop.permute.xlu0 %260 }
 0x136   :  { %v2745_v7 = vadd.f32 %v5425_v51, %v2505_v31  ;;  %v2783_v54 = vadd.f32 %v2782_v3, %v2183_v33  ;;  %v5426_v40 = vrot.slane %v3559_v53, %v3258_v47  ;;  %v5427_v27 = vrot.slane %v5347_v6, %v3258_v47 }
 0x137   :  { %v676_v43 = vmax.f32 %v354_v10, 0.0  ;;  %v311_v12 = vsel %vm294_vm4, %v257_v52, %v4467_v34  ;;  %v5428_v24 = vrot.slane %v5394_v16, %v3258_v47  ;;  %v1825_v41 = vsel %vm1808_vm6, %v4417_v58, %v1775_v55 }
 0x138   :  { %v1350_v61 = vmul.f32 %v5426_v40, %v1111_v8  ;;  %v1672_v50 = vmul.f32 %v5427_v27, %v1433_v11  ;;  %v2833_v49 = vadd.f32 %v2832_v25, %v2745_v7  ;;  %v355_v45 = vsub.f32 %v4515_v30, %v311_v12 }
 0x139   :  { %v632_v46 = vmul.f32 %v5428_v24, %v393_v14  ;;  %v5429_v36 = vrot.slane %v5396_v59, %v3258_v47  ;;  %v1867_v38 = vsub.f32 %v4439_v62, %v1825_v41  ;;  %v1824_v52 = vsel %vm1808_vm6, %v1775_v55, %v4497_v23 }
 0x13a   :  { %v1029_v22 = vsel %vm1012_vm5, %v4445_v37, %v979_v20  ;;  %v394_v10 = vmul.f32 %v355_v45, %v355_v45  ;;  %v677_v29 = vmax.f32 %v355_v45, 0.0  ;;  %v1868_v63 = vsub.f32 %v2909_v15, %v1824_v52 }
 0x13b   :  { %v915_v13 = vmul.f32 %v5429_v36, %v676_v43  ;;  %v1389_v18 = vadd.f32 %v1350_v61, %v632_v46  ;;  %v1906_v3 = vmul.f32 %v1867_v38, %v1867_v38  ;;  %v2228_v33 = vmax.f32 %v1867_v38, 0.0 }
 0x13c   :  { %v1073_v31 = vsub.f32 %v4515_v30, %v1029_v22  ;;  %v5430_v62 = vrot.slane %v5394_v16, %v3278_v0  ;;  %v5431_v55 = vrot.slane %v5396_v59, %v3278_v0  ;;  %v1907_v37 = vmul.f32 %v1868_v63, %v1868_v63 }
 0x13d   :  { %v1711_v58 = vadd.f32 %v1672_v50, %v915_v13  ;;  %v2229_v25 = vmax.f32 %v1868_v63, 0.0  ;;  %v5432_v15 = vrot.slane %v3598_v44, %v3213_v17  ;;  %v5433_v7 = vrot.slane %v3637_v57, %v3213_v17 }
 0x13e   :  { %v633_v8 = vmul.f32 %v5430_v62, %v394_v10  ;;  %v916_v11 = vmul.f32 %v5431_v55, %v677_v29  ;;  %v1112_v40 = vmul.f32 %v1073_v31, %v1073_v31  ;;  %v1434_v61 = vmax.f32 %v1073_v31, 0.0  ;;  %v4567_v29 = vpop.permute.xlu1 %262 }
 0x13f   :  { %v2145_v51 = vmul.f32 %v5432_v15, %v1906_v3  ;;  %v2467_v14 = vmul.f32 %v5433_v7, %v2228_v33  ;;  %v5434_v27 = vrot.slane %v3598_v44, %v3258_v47  ;;  %v5435_v43 = vrot.slane %v3637_v57, %v3258_v47  ;;  %v1779_v33 = vpop.permute.xlu0 %1778 }
 0x140   :  { %v1226_v24 = vrot.slane %v3559_v53, %v3328_v5  ;;  %v1548_v46 = vrot.slane %v5347_v6, %v3328_v5  ;;  %v1351_v36 = vmul.f32 %v1222_v39, %v1112_v40  ;;  %v1673_v13 = vmul.f32 %v1544_v19, %v1434_v61 }
 0x141   :  { %v2146_v50 = vmul.f32 %v5434_v27, %v1907_v37  ;;  %v2468_v12 = vmul.f32 %v5435_v43, %v2229_v25  ;;  %v2184_v45 = vadd.f32 %v2145_v51, %v1388_v9  ;;  %v2506_v41 = vadd.f32 %v2467_v14, %v1710_v28 }
 0x142   :  { %v1028_v22 = vsel %vm1012_vm5, %v979_v20, %v4531_v21  ;;  %v508_v10 = vrot.slane %v5394_v16, %v3328_v5  ;;  %v5436_v9 = vsel %vm3233_vm2, %v3818_v48, 0.0  ;;  %v4573_v63 = vadd.f32 %v1351_v36, %v633_v8  ;;  %v4604_v14 = vpop.permute.xlu1 %1780 }
 0x143   :  { %v2185_v38 = vadd.f32 %v2146_v50, %v1389_v18  ;;  %v2507_v52 = vadd.f32 %v2468_v12, %v1711_v58  ;;  %v2746_v39 = vadd.f32 %v5436_v9, %v2506_v41  ;;  %v2784_v28 = vadd.f32 %v2783_v54, %v2184_v45  ;;  %v2911_v18 = vld [vmem:[#allocation2 + $0xb0] sm:$0xff] }
 0x144   :  { %v4575_v19 = vadd.f32 %v1673_v13, %v916_v11  ;;  %v1074_v58 = vsub.f32 %v2911_v18, %v1028_v22  ;;  %v791_v3 = vrot.slane %v5396_v59, %v3328_v5  ;;  %v310_v48 = vsel %vm294_vm4, %v4467_v34, %v261_v35 }
 0x145   :  { %v2747_v20 = vadd.f32 %v2708_v42, %v2507_v52  ;;  %v2834_v54 = vadd.f32 %v2833_v49, %v2746_v39  ;;  %v4586_v31 = vadd.f32 %v2784_v28, %v2185_v38  ;;  %v356_v62 = vsub.f32 %v2911_v18, %v310_v48  ;;  %v4597_v49 = vld [vmem:[#allocation2 + $0xb8] sm:$0xff] }
 0x146   :  { %v512_v8 = vrot.slane %v5394_v16, %v3341_v2  ;;  %v1113_v55 = vmul.f32 %v1074_v58, %v1074_v58  ;;  %v1435_v26 = vmax.f32 %v1074_v58, 0.0  ;;  %v795_v42 = vrot.slane %v5396_v59, %v3341_v2 }
 0x147   :  { %v309_v11 = vsel %vm294_vm4, %v261_v35, %v4567_v29  ;;  %v4595_v37 = vadd.f32 %v2834_v54, %v2747_v20  ;;  %v395_v34 = vmul.f32 %v356_v62, %v356_v62  ;;  %v678_v25 = vmax.f32 %v356_v62, 0.0 }
 0x148   :  { %v357_v15 = vsub.f32 %v4597_v49, %v309_v11  ;;  %v1352_v51 = vmul.f32 %v1226_v24, %v1113_v55  ;;  %v1674_v7 = vmul.f32 %v1548_v46, %v1435_v26  ;;  %v2018_v16 = vrot.slane %v3598_v44, %v3278_v0  ;;  %v983_v46 = vpop.permute.xlu0 %982 }
 0x149   :  { %v2340_v59 = vrot.slane %v3637_v57, %v3278_v0  ;;  %v634_v40 = vmul.f32 %v508_v10, %v395_v34  ;;  %v917_v35 = vmul.f32 %v791_v3, %v678_v25  ;;  %v2547_v50 = vrot.slane %v4515_v30, 1  ;;  %v4622_v10 = vld [vmem:[%s5209_s1 + $0x18] sm:$0xff] }
 0x14a   :  { %v396_v61 = vmul.f32 %v357_v15, %v357_v15  ;;  %v679_v27 = vmax.f32 %v357_v15, 0.0  ;;  %v1823_v43 = vsel %vm1808_vm6, %v4497_v23, %v1779_v33  ;;  %v2022_v12 = vrot.slane %v3598_v44, %v3328_v5 }
 0x14b   :  { %v2344_v24 = vrot.slane %v3637_v57, %v3328_v5  ;;  %v1391_v45 = vadd.f32 %v1352_v51, %v634_v40  ;;  %v1713_v41 = vadd.f32 %v1674_v7, %v917_v35  ;;  %v2586_v38 = vsub.f32 %v4515_v30, %v2547_v50 }
 0x14c   :  { %v635_v36 = vmul.f32 %v512_v8, %v396_v61  ;;  %v918_v13 = vmul.f32 %v795_v42, %v679_v27  ;;  %v1869_v52 = vsub.f32 %v4515_v30, %v1823_v43  ;;  %v2548_v22 = vrot.slane %v2911_v18, 1 }
 0x14d   :  { %v1822_v23 = vsel %vm1808_vm6, %v1779_v33, %v4604_v14  ;;  %v1230_v39 = vrot.slane %v3559_v53, %v3341_v2  ;;  %v1552_v28 = vrot.slane %v5347_v6, %v3341_v2  ;;  %v1027_v30 = vsel %vm1012_vm5, %v4531_v21, %v983_v46  ;;  %v4631_v33 = vpop.permute.xlu1 %984 }
 0x14e   :  { %v1870_v9 = vsub.f32 %v2911_v18, %v1822_v23  ;;  %v2625_v20 = vmax.f32 %v2586_v38, 0.0  ;;  %v1908_v58 = vmul.f32 %v1869_v52, %v1869_v52  ;;  %v2230_v3 = vmax.f32 %v1869_v52, 0.0 }
 0x14f   :  { %v2587_v48 = vsub.f32 %v2911_v18, %v2548_v22  ;;  %v1075_v8 = vsub.f32 %v4597_v49, %v1027_v30  ;;  %v187_v55 = vshra.s32 %v4622_v10, 2  ;;  %v2913_v22 = vld [vmem:[#allocation2 + $0xc0] sm:$0xff] }
 0x150   :  { %v1909_v54 = vmul.f32 %v1870_v9, %v1870_v9  ;;  %v2231_v62 = vmax.f32 %v1870_v9, 0.0  ;;  %v2670_v53 = vmul.f32 1.882353, %v2625_v20  ;;  %v2147_v26 = vmul.f32 %v2018_v16, %v1908_v58 }
 0x151   :  { %v2469_v42 = vmul.f32 %v2340_v59, %v2230_v3  ;;  %v2626_v6 = vmax.f32 %v2587_v48, 0.0  ;;  %v1114_v25 = vmul.f32 %v1075_v8, %v1075_v8  ;;  %v1436_v21 = vmax.f32 %v1075_v8, 0.0 }
 0x152   :  { %v2148_v11 = vmul.f32 %v2022_v12, %v1909_v54  ;;  %v2470_v34 = vmul.f32 %v2344_v24, %v2231_v62  ;;  %v2709_v15 = vsel %vm3233_vm2, %v2670_v53, 0.0  ;;  %v2186_v18 = vadd.f32 %v2147_v26, %v4573_v63  ;;  %v265_v12 = vpop.permute.xlu0 %264  ;;  %v4642_v24 = vpop.permute.xlu1 %266  ;;  %v4678_v62 = vld [vmem:[#allocation2 + $0xc8] sm:$0xff] }
 0x153   :  { %v2508_v51 = vadd.f32 %v2469_v42, %v4575_v19  ;;  %v2671_v7 = vmul.f32 1.882353, %v2626_v6  ;;  %v1353_v61 = vmul.f32 %v1230_v39, %v1114_v25  ;;  %v1675_v27 = vmul.f32 %v1552_v28, %v1436_v21 }
 0x154   :  { %v2187_v40 = vadd.f32 %v2148_v11, %v1391_v45  ;;  %v2509_v35 = vadd.f32 %v2470_v34, %v1713_v41  ;;  %v2786_v16 = vadd.f32 %v4586_v31, %v2186_v18  ;;  %v192_v43 = vand.u32 3, %v187_v55 }
 0x155   :  { %v2748_v50 = vadd.f32 %v2709_v15, %v2508_v51  ;;  %v2710_v59 = vsel %vm3233_vm2, %v2671_v7, 0.0  ;;  %v4644_v52 = vadd.f32 %v1353_v61, %v635_v36  ;;  %v4646_v63 = vadd.f32 %v1675_v27, %v918_v13 }
 0x156   :  { %v2749_v38 = vadd.f32 %v2710_v59, %v2509_v35  ;;  %v1026_v19 = vsel %vm1012_vm5, %v983_v46, %v4631_v33  ;;  %v4652_v41 = vadd.f32 %v2786_v16, %v2187_v40  ;;  %v4654_v31 = vcvt.s32.f32 %v192_v43  ;;  %v1783_v48 = vpop.permute.xlu0 %1782  ;;  %v4690_v21 = vpop.permute.xlu1 %1784 }
 0x157   :  { %v2836_v45 = vadd.f32 %v4595_v37, %v2748_v50  ;;  %v1076_v23 = vsub.f32 %v2913_v22, %v1026_v19  ;;  %v177_v9 = vand.u32 3, %v4622_v10  ;;  %v308_v36 = vsel %vm294_vm4, %v4567_v29, %v265_v12 }
 0x158   :  { %v307_v13 = vsel %vm294_vm4, %v265_v12, %v4642_v24  ;;  %v1234_v37 = vrot.slane %v4654_v31, %v3152_v56  ;;  %v4668_v46 = vmin.f32 %v4654_v31, 1.0  ;;  %v358_v58 = vsub.f32 %v2913_v22, %v308_v36 }
 0x159   :  { %v4663_v39 = vadd.f32 %v2836_v45, %v2749_v38  ;;  %v1115_v28 = vmul.f32 %v1076_v23, %v1076_v23  ;;  %v1437_v30 = vmax.f32 %v1076_v23, 0.0  ;;  %v4670_v20 = vcvt.s32.f32 %v177_v9 }
 0x15a   :  { %v1556_v29 = vrot.slane %v4668_v46, %v3152_v56  ;;  %v2549_v3 = vrot.slane %v4597_v49, 1  ;;  %v4681_v8 = vsub.f32 %v4678_v62, %v307_v13  ;;  %v2026_v26 = vrot.slane %v3598_v44, %v3341_v2  ;;  %v987_v16 = vpop.permute.xlu0 %986 }
 0x15b   :  { %v4676_v54 = vmin.f32 %v4670_v20, 1.0  ;;  %v1354_v55 = vmul.f32 %v1234_v37, %v1115_v28  ;;  %v516_v53 = vrot.slane %v4670_v20, %v3152_v56  ;;  %v2348_v42 = vrot.slane %v3637_v57, %v3341_v2  ;;  %v4711_v37 = vpop.permute.xlu1 %988 }
 0x15c   :  { %v1676_v6 = vmul.f32 %v1556_v29, %v1437_v30  ;;  %v397_v11 = vmul.f32 %v358_v58, %v358_v58  ;;  %v680_v34 = vmax.f32 %v358_v58, 0.0  ;;  %v2588_v25 = vsub.f32 %v4597_v49, %v2549_v3 }
 0x15d   :  { %v520_v15 = vrot.slane %v4670_v20, %v3160_v60  ;;  %v1821_v18 = vsel %vm1808_vm6, %v4604_v14, %v1783_v48  ;;  %v202_v51 = vshra.s32 %v4622_v10, 4  ;;  %v2550_v44 = vrot.slane %v2913_v22, 1 }
 0x15e   :  { %v799_v57 = vrot.slane %v4676_v54, %v3152_v56  ;;  %v398_v7 = vmul.f32 %v4681_v8, %v4681_v8  ;;  %v681_v40 = vmax.f32 %v4681_v8, 0.0  ;;  %v2627_v35 = vmax.f32 %v2588_v25, 0.0 }
 0x15f   :  { %v1871_v61 = vsub.f32 %v4597_v49, %v1821_v18  ;;  %v207_v27 = vand.u32 3, %v202_v51  ;;  %v2589_v50 = vsub.f32 %v2913_v22, %v2550_v44  ;;  %v1820_v14 = vsel %vm1808_vm6, %v1783_v48, %v4690_v21 }
 0x160   :  { %v636_v10 = vmul.f32 %v516_v53, %v397_v11  ;;  %v803_v59 = vrot.slane %v4676_v54, %v3160_v60  ;;  %v2672_v43 = vmul.f32 1.882353, %v2627_v35  ;;  %v1872_v12 = vsub.f32 %v2913_v22, %v1820_v14 }
 0x161   :  { %v1910_v38 = vmul.f32 %v1871_v61, %v1871_v61  ;;  %v2232_v19 = vmax.f32 %v1871_v61, 0.0  ;;  %v4709_v45 = vcvt.s32.f32 %v207_v27  ;;  %v2628_v23 = vmax.f32 %v2589_v50, 0.0  ;;  %v4736_v61 = vpop.permute.xlu1 %270 }
 0x162   :  { %v919_v9 = vmul.f32 %v799_v57, %v680_v34  ;;  %v637_v49 = vmul.f32 %v520_v15, %v398_v7  ;;  %v1911_v36 = vmul.f32 %v1872_v12, %v1872_v12  ;;  %v2233_v13 = vmax.f32 %v1872_v12, 0.0  ;;  %v269_v34 = vpop.permute.xlu0 %268 }
 0x163   :  { %v2149_v28 = vmul.f32 %v2026_v26, %v1910_v38  ;;  %v2471_v30 = vmul.f32 %v2348_v42, %v2232_v19  ;;  %v2030_v58 = vrot.slane %v4709_v45, %v3152_v56  ;;  %v4716_v29 = vmin.f32 %v4709_v45, 1.0 }
 0x164   :  { %v1393_v22 = vadd.f32 %v1354_v55, %v636_v10  ;;  %v2711_v3 = vsel %vm3233_vm2, %v2672_v43, 0.0  ;;  %v2673_v48 = vmul.f32 1.882353, %v2628_v23  ;;  %v1025_v8 = vsel %vm1012_vm5, %v4631_v33, %v987_v16 }
 0x165   :  { %v2188_v53 = vadd.f32 %v2149_v28, %v4644_v52  ;;  %v2510_v26 = vadd.f32 %v2471_v30, %v4646_v63  ;;  %v2352_v42 = vrot.slane %v4716_v29, %v3152_v56  ;;  %v2150_v11 = vmul.f32 %v2030_v58, %v1911_v36 }
 0x166   :  { %v1715_v25 = vadd.f32 %v1676_v6, %v919_v9  ;;  %v1238_v55 = vrot.slane %v4654_v31, %v3160_v60  ;;  %v1077_v15 = vsub.f32 %v4678_v62, %v1025_v8  ;;  %v1024_v18 = vsel %vm1012_vm5, %v987_v16, %v4711_v37  ;;  %v2915_v6 = vld [vmem:[#allocation2 + $0xd0] sm:$0xff]  ;;  %v1787_v9 = vpop.permute.xlu0 %1786 }
 0x167   :  { %v2750_v33 = vadd.f32 %v2711_v3, %v2510_v26  ;;  %v2788_v52 = vadd.f32 %v4652_v41, %v2188_v53  ;;  %v2472_v51 = vmul.f32 %v2352_v42, %v2233_v13  ;;  %v1560_v63 = vrot.slane %v4668_v46, %v3160_v60  ;;  %v4767_v26 = vpop.permute.xlu1 %1788 }
 0x168   :  { %v2189_v44 = vadd.f32 %v2150_v11, %v1393_v22  ;;  %v1116_v57 = vmul.f32 %v1077_v15, %v1077_v15  ;;  %v1438_v7 = vmax.f32 %v1077_v15, 0.0  ;;  %v1078_v35 = vsub.f32 %v2915_v6, %v1024_v18 }
 0x169   :  { %v4739_v27 = vadd.f32 %v4663_v39, %v2750_v33  ;;  %v2712_v50 = vsel %vm3233_vm2, %v2673_v48, 0.0  ;;  %v2511_v14 = vadd.f32 %v2472_v51, %v1715_v25  ;;  %v306_v41 = vsel %vm294_vm4, %v4642_v24, %v269_v34  ;;  %v4763_v48 = vld [vmem:[#allocation2 + $0xd8] sm:$0xff] }
 0x16a   :  { %v920_v16 = vmul.f32 %v803_v59, %v681_v40  ;;  %v1355_v10 = vmul.f32 %v1238_v55, %v1116_v57  ;;  %v1242_v43 = vrot.slane %v4654_v31, %v3180_v4  ;;  %v1564_v12 = vrot.slane %v4668_v46, %v3180_v4 }
 0x16b   :  { %v1677_v38 = vmul.f32 %v1560_v63, %v1438_v7  ;;  %v1117_v19 = vmul.f32 %v1078_v35, %v1078_v35  ;;  %v524_v39 = vrot.slane %v4670_v20, %v3180_v4  ;;  %v360_v23 = vsub.f32 %v2915_v6, %v306_v41 }
 0x16c   :  { %v2751_v36 = vadd.f32 %v2712_v50, %v2511_v14  ;;  %v4752_v13 = vadd.f32 %v2788_v52, %v2189_v44  ;;  %v1439_v28 = vmax.f32 %v1078_v35, 0.0  ;;  %v807_v24 = vrot.slane %v4676_v54, %v3180_v4  ;;  %v991_v44 = vpop.permute.xlu0 %990 }
 0x16d   :  { %v399_v40 = vmul.f32 %v360_v23, %v360_v23  ;;  %v682_v59 = vmax.f32 %v360_v23, 0.0  ;;  %v528_v30 = vrot.slane %v4670_v20, %v3213_v17  ;;  %v305_v58 = vsel %vm294_vm4, %v269_v34, %v4736_v61 }
 0x16e   :  { %v1394_v22 = vadd.f32 %v1355_v10, %v637_v49  ;;  %v811_v3 = vrot.slane %v4676_v54, %v3213_v17  ;;  %v361_v8 = vsub.f32 %v4763_v48, %v305_v58  ;;  %v2551_v53 = vrot.slane %v4678_v62, 1 }
 0x16f   :  { %v1716_v42 = vadd.f32 %v1677_v38, %v920_v16  ;;  %v1356_v11 = vmul.f32 %v1242_v43, %v1117_v19  ;;  %v638_v25 = vmul.f32 %v524_v39, %v399_v40  ;;  %v1819_v55 = vsel %vm1808_vm6, %v4690_v21, %v1787_v9  ;;  %v4785_v38 = vpop.permute.xlu1 %992 }
 0x170   :  { %v1678_v34 = vmul.f32 %v1564_v12, %v1439_v28  ;;  %v2034_v49 = vrot.slane %v4709_v45, %v3160_v60  ;;  %v2590_v15 = vsub.f32 %v4678_v62, %v2551_v53  ;;  %v1873_v18 = vsub.f32 %v4678_v62, %v1819_v55 }
 0x171   :  { %v921_v33 = vmul.f32 %v807_v24, %v682_v59  ;;  %v2356_v52 = vrot.slane %v4716_v29, %v3160_v60  ;;  %v2038_v51 = vrot.slane %v4709_v45, %v3180_v4  ;;  %v2552_v63 = vrot.slane %v2915_v6, 1 }
 0x172   :  { %v400_v57 = vmul.f32 %v361_v8, %v361_v8  ;;  %v683_v7 = vmax.f32 %v361_v8, 0.0  ;;  %v2629_v21 = vmax.f32 %v2590_v15, 0.0  ;;  %v1912_v35 = vmul.f32 %v1873_v18, %v1873_v18 }
 0x173   :  { %v1395_v50 = vadd.f32 %v1356_v11, %v638_v25  ;;  %v2234_v14 = vmax.f32 %v1873_v18, 0.0  ;;  %v2591_v41 = vsub.f32 %v2915_v6, %v2552_v63  ;;  %v1818_v62 = vsel %vm1808_vm6, %v1787_v9, %v4767_v26  ;;  %v273_v11 = vpop.permute.xlu0 %272 }
 0x174   :  { %v2674_v16 = vmul.f32 1.882353, %v2629_v21  ;;  %v2151_v10 = vmul.f32 %v2034_v49, %v1912_v35  ;;  %v2360_v43 = vrot.slane %v4716_v29, %v3180_v4  ;;  %v1874_v12 = vsub.f32 %v2915_v6, %v1818_v62  ;;  %v2917_v21 = vld [vmem:[#allocation2 + $0xe0] sm:$0xff] }
 0x175   :  { %v1717_v19 = vadd.f32 %v1678_v34, %v921_v33  ;;  %v2473_v39 = vmul.f32 %v2356_v52, %v2234_v14  ;;  %v2630_v23 = vmax.f32 %v2591_v41, 0.0  ;;  %v1023_v28 = vsel %vm1012_vm5, %v4711_v37, %v991_v44  ;;  %v4801_v14 = vpop.permute.xlu1 %274 }
 0x176   :  { %v2713_v24 = vsel %vm3233_vm2, %v2674_v16, 0.0  ;;  %v1913_v40 = vmul.f32 %v1874_v12, %v1874_v12  ;;  %v2235_v9 = vmax.f32 %v1874_v12, 0.0  ;;  %v1246_v59 = vrot.slane %v4654_v31, %v3213_v17 }
 0x177   :  { %v2512_v58 = vadd.f32 %v2473_v39, %v1716_v42  ;;  %v2675_v8 = vmul.f32 1.882353, %v2630_v23  ;;  %v1568_v6 = vrot.slane %v4668_v46, %v3213_v17  ;;  %v1079_v53 = vsub.f32 %v4763_v48, %v1023_v28 }
 0x178   :  { %v2190_v25 = vadd.f32 %v2151_v10, %v1394_v22  ;;  %v2152_v55 = vmul.f32 %v2038_v51, %v1913_v40  ;;  %v2474_v34 = vmul.f32 %v2360_v43, %v2235_v9  ;;  %v1022_v37 = vsel %vm1012_vm5, %v991_v44, %v4785_v38 }
 0x179   :  { %v2839_v49 = vadd.f32 %v4739_v27, %v2751_v36  ;;  %v2752_v15 = vadd.f32 %v2713_v24, %v2512_v58  ;;  %v1118_v18 = vmul.f32 %v1079_v53, %v1079_v53  ;;  %v1440_v33 = vmax.f32 %v1079_v53, 0.0  ;;  %v4828_v58 = vpop.permute.xlu1 %1792 }
 0x17a   :  { %v639_v42 = vmul.f32 %v528_v30, %v400_v57  ;;  %v2191_v52 = vadd.f32 %v2152_v55, %v1395_v50  ;;  %v2513_v63 = vadd.f32 %v2474_v34, %v1717_v19  ;;  %v1080_v35 = vsub.f32 %v2917_v21, %v1022_v37 }
 0x17b   :  { %v922_v41 = vmul.f32 %v811_v3, %v683_v7  ;;  %v2714_v22 = vsel %vm3233_vm2, %v2675_v8, 0.0  ;;  %v1357_v51 = vmul.f32 %v1246_v59, %v1118_v18  ;;  %v1679_v62 = vmul.f32 %v1568_v6, %v1440_v33  ;;  %v1791_v7 = vpop.permute.xlu0 %1790 }
 0x17c   :  { %v2790_v44 = vadd.f32 %v4752_v13, %v2190_v25  ;;  %v1250_v27 = vrot.slane %v4654_v31, %v3258_v47  ;;  %v1572_v36 = vrot.slane %v4668_v46, %v3258_v47  ;;  %v532_v30 = vrot.slane %v4670_v20, %v3258_v47 }
 0x17d   :  { %v2840_v57 = vadd.f32 %v2839_v49, %v2752_v15  ;;  %v1119_v50 = vmul.f32 %v1080_v35, %v1080_v35  ;;  %v1441_v16 = vmax.f32 %v1080_v35, 0.0  ;;  %v304_v3 = vsel %vm294_vm4, %v4736_v61, %v273_v11  ;;  %v4824_v61 = vld [vmem:[#allocation2 + $0xe8] sm:$0xff] }
 0x17e   :  { %v2753_v10 = vadd.f32 %v2714_v22, %v2513_v63  ;;  %v4815_v43 = vadd.f32 %v2790_v44, %v2191_v52  ;;  %v815_v13 = vrot.slane %v4676_v54, %v3258_v47  ;;  %v362_v12 = vsub.f32 %v2917_v21, %v304_v3 }
 0x17f   :  { %v1396_v19 = vadd.f32 %v1357_v51, %v639_v42  ;;  %v1718_v39 = vadd.f32 %v1679_v62, %v922_v41  ;;  %v536_v23 = vrot.slane %v4670_v20, %v3278_v0  ;;  %v303_v28 = vsel %vm294_vm4, %v273_v11, %v4801_v14  ;;  %v995_v33 = vpop.permute.xlu0 %994 }
 0x180   :  { %v401_v24 = vmul.f32 %v362_v12, %v362_v12  ;;  %v684_v40 = vmax.f32 %v362_v12, 0.0  ;;  %v363_v9 = vsub.f32 %v4824_v61, %v303_v28  ;;  %v2553_v59 = vrot.slane %v4763_v48, 1 }
 0x181   :  { %v1358_v8 = vmul.f32 %v1250_v27, %v1119_v50  ;;  %v1680_v6 = vmul.f32 %v1572_v36, %v1441_v16  ;;  %v1817_v53 = vsel %vm1808_vm6, %v4767_v26, %v1791_v7  ;;  %v2554_v25 = vrot.slane %v2917_v21, 1 }
 0x182   :  { %v923_v55 = vmul.f32 %v815_v13, %v684_v40  ;;  %v819_v11 = vrot.slane %v4676_v54, %v3278_v0  ;;  %v2042_v34 = vrot.slane %v4709_v45, %v3213_v17  ;;  %v2364_v37 = vrot.slane %v4716_v29, %v3213_v17 }
 0x183   :  { %v2592_v49 = vsub.f32 %v4763_v48, %v2553_v59  ;;  %v1875_v15 = vsub.f32 %v4763_v48, %v1817_v53  ;;  %v2593_v18 = vsub.f32 %v2917_v21, %v2554_v25  ;;  %v1816_v26 = vsel %vm1808_vm6, %v1791_v7, %v4828_v58  ;;  %v4853_v7 = vpop.permute.xlu1 %996 }
 0x184   :  { %v640_v42 = vmul.f32 %v532_v30, %v401_v24  ;;  %v402_v52 = vmul.f32 %v363_v9, %v363_v9  ;;  %v2046_v63 = vrot.slane %v4709_v45, %v3258_v47  ;;  %v2368_v35 = vrot.slane %v4716_v29, %v3258_v47 }
 0x185   :  { %v2631_v41 = vmax.f32 %v2592_v49, 0.0  ;;  %v1914_v22 = vmul.f32 %v1875_v15, %v1875_v15  ;;  %v2236_v51 = vmax.f32 %v1875_v15, 0.0  ;;  %v2632_v62 = vmax.f32 %v2593_v18, 0.0 }
 0x186   :  { %v1719_v44 = vadd.f32 %v1680_v6, %v923_v55  ;;  %v685_v48 = vmax.f32 %v363_v9, 0.0  ;;  %v1876_v27 = vsub.f32 %v2917_v21, %v1816_v26  ;;  %v1021_v36 = vsel %vm1012_vm5, %v4785_v38, %v995_v33  ;;  %v277_v55 = vpop.permute.xlu0 %276 }
 0x187   :  { %v2676_v50 = vmul.f32 1.882353, %v2631_v41  ;;  %v2153_v30 = vmul.f32 %v2042_v34, %v1914_v22  ;;  %v2475_v16 = vmul.f32 %v2364_v37, %v2236_v51  ;;  %v1254_v3 = vrot.slane %v4654_v31, %v3278_v0  ;;  %v2919_v22 = vld [vmem:[#allocation2 + $0xf0] sm:$0xff] }
 0x188   :  { %v1915_v13 = vmul.f32 %v1876_v27, %v1876_v27  ;;  %v2237_v12 = vmax.f32 %v1876_v27, 0.0  ;;  %v1576_v28 = vrot.slane %v4668_v46, %v3278_v0  ;;  %v1081_v24 = vsub.f32 %v4824_v61, %v1021_v36 }
 0x189   :  { %v2715_v21 = vsel %vm3233_vm2, %v2676_v50, 0.0  ;;  %v2192_v40 = vadd.f32 %v2153_v30, %v1396_v19  ;;  %v2514_v38 = vadd.f32 %v2475_v16, %v1718_v39  ;;  %v2677_v9 = vmul.f32 1.882353, %v2632_v62 }
 0x18a   :  { %v2154_v59 = vmul.f32 %v2046_v63, %v1915_v13  ;;  %v2476_v6 = vmul.f32 %v2368_v35, %v2237_v12  ;;  %v1120_v53 = vmul.f32 %v1081_v24, %v1081_v24  ;;  %v1442_v25 = vmax.f32 %v1081_v24, 0.0  ;;  %v1795_v36 = vpop.permute.xlu0 %1794 }
 0x18b   :  { %v2841_v34 = vadd.f32 %v2840_v57, %v2753_v10  ;;  %v1397_v37 = vadd.f32 %v1358_v8, %v640_v42  ;;  %v2754_v49 = vadd.f32 %v2715_v21, %v2514_v38  ;;  %v1020_v15 = vsel %vm1012_vm5, %v995_v33, %v4853_v7  ;;  %v4867_v57 = vpop.permute.xlu1 %278 }
 0x18c   :  { %v641_v18 = vmul.f32 %v536_v23, %v402_v52  ;;  %v924_v26 = vmul.f32 %v819_v11, %v685_v48  ;;  %v2515_v41 = vadd.f32 %v2476_v6, %v1719_v44  ;;  %v1258_v19 = vrot.slane %v4654_v31, %v3328_v5 }
 0x18d   :  { %v2716_v39 = vsel %vm3233_vm2, %v2677_v9, 0.0  ;;  %v1359_v63 = vmul.f32 %v1254_v3, %v1120_v53  ;;  %v1681_v35 = vmul.f32 %v1576_v28, %v1442_v25  ;;  %v1082_v51 = vsub.f32 %v2919_v22, %v1020_v15  ;;  %v4892_v3 = vld [vmem:[#allocation2 + $0xf8] sm:$0xff] }
 0x18e   :  { %v4870_v10 = vadd.f32 %v4815_v43, %v2192_v40  ;;  %v4872_v8 = vadd.f32 %v2841_v34, %v2754_v49  ;;  %v4874_v23 = vadd.f32 %v2154_v59, %v1397_v37  ;;  %v1580_v11 = vrot.slane %v4668_v46, %v3328_v5 }
 0x18f   :  { %v1121_v33 = vmul.f32 %v1082_v51, %v1082_v51  ;;  %v1443_v42 = vmax.f32 %v1082_v51, 0.0  ;;  %v540_v52 = vrot.slane %v4670_v20, %v3328_v5  ;;  %v302_v62 = vsel %vm294_vm4, %v4801_v14, %v277_v55  ;;  %v4905_v59 = vpop.permute.xlu1 %1796 }
 0x190   :  { %v4883_v44 = vadd.f32 %v2716_v39, %v2515_v41  ;;  %v823_v43 = vrot.slane %v4676_v54, %v3328_v5  ;;  %v364_v48 = vsub.f32 %v2919_v22, %v302_v62  ;;  %v301_v27 = vsel %vm294_vm4, %v277_v55, %v4867_v57 }
 0x191   :  { %v1398_v50 = vadd.f32 %v1359_v63, %v641_v18  ;;  %v1720_v30 = vadd.f32 %v1681_v35, %v924_v26  ;;  %v544_v16 = vrot.slane %v4670_v20, %v3341_v2  ;;  %v4895_v14 = vsub.f32 %v4892_v3, %v301_v27 }
 0x192   :  { %v403_v13 = vmul.f32 %v364_v48, %v364_v48  ;;  %v686_v12 = vmax.f32 %v364_v48, 0.0  ;;  %v827_v28 = vrot.slane %v4676_v54, %v3341_v2  ;;  %v2555_v24 = vrot.slane %v4824_v61, 1 }
 0x193   :  { %v1360_v21 = vmul.f32 %v1258_v19, %v1121_v33  ;;  %v1682_v40 = vmul.f32 %v1580_v11, %v1443_v42  ;;  %v2050_v38 = vrot.slane %v4709_v45, %v3278_v0  ;;  %v1815_v9 = vsel %vm1808_vm6, %v4828_v58, %v1795_v36  ;;  %v999_v19 = vpop.permute.xlu0 %998 }
 0x194   :  { %v642_v6 = vmul.f32 %v540_v52, %v403_v13  ;;  %v925_v53 = vmul.f32 %v823_v43, %v686_v12  ;;  %v2594_v25 = vsub.f32 %v4824_v61, %v2555_v24  ;;  %v1877_v55 = vsub.f32 %v4824_v61, %v1815_v9  ;;  %v4921_v61 = vld [vmem:[%s5209_s1 + $0x20] sm:$0xff] }
 0x195   :  { %v404_v34 = vmul.f32 %v4895_v14, %v4895_v14  ;;  %v687_v37 = vmax.f32 %v4895_v14, 0.0  ;;  %v2372_v49 = vrot.slane %v4716_v29, %v3278_v0  ;;  %v2556_v15 = vrot.slane %v2919_v22, 1  ;;  %v4930_v14 = vpop.permute.xlu1 %1000 }
 0x196   :  { %v2633_v18 = vmax.f32 %v2594_v25, 0.0  ;;  %v1916_v26 = vmul.f32 %v1877_v55, %v1877_v55  ;;  %v2054_v58 = vrot.slane %v4709_v45, %v3328_v5  ;;  %v2376_v41 = vrot.slane %v4716_v29, %v3328_v5 }
 0x197   :  { %v1399_v39 = vadd.f32 %v1360_v21, %v642_v6  ;;  %v2238_v63 = vmax.f32 %v1877_v55, 0.0  ;;  %v2595_v35 = vsub.f32 %v2919_v22, %v2556_v15  ;;  %v1814_v51 = vsel %vm1808_vm6, %v1795_v36, %v4905_v59 }
 0x198   :  { %v1721_v11 = vadd.f32 %v1682_v40, %v925_v53  ;;  %v2678_v33 = vmul.f32 1.882353, %v2633_v18  ;;  %v2155_v42 = vmul.f32 %v2050_v38, %v1916_v26  ;;  %v1878_v52 = vsub.f32 %v2919_v22, %v1814_v51  ;;  %v281_v18 = vpop.permute.xlu0 %280 }
 0x199   :  { %v2477_v62 = vmul.f32 %v2372_v49, %v2238_v63  ;;  %v2634_v43 = vmax.f32 %v2595_v35, 0.0  ;;  %v1019_v48 = vsel %vm1012_vm5, %v4853_v7, %v999_v19  ;;  %v188_v27 = vshra.s32 %v4921_v61, 2 }
 0x19a   :  { %v2717_v13 = vsel %vm3233_vm2, %v2678_v33, 0.0  ;;  %v1917_v12 = vmul.f32 %v1878_v52, %v1878_v52  ;;  %v2239_v24 = vmax.f32 %v1878_v52, 0.0  ;;  %v1262_v36 = vrot.slane %v4654_v31, %v3341_v2 }
 0x19b   :  { %v2516_v21 = vadd.f32 %v2477_v62, %v1720_v30  ;;  %v2679_v22 = vmul.f32 1.882353, %v2634_v43  ;;  %v1083_v40 = vsub.f32 %v4892_v3, %v1019_v48  ;;  %v193_v38 = vand.u32 3, %v188_v27  ;;  %v4959_v62 = vpop.permute.xlu1 %282 }
 0x19c   :  { %v2156_v9 = vmul.f32 %v2054_v58, %v1917_v12  ;;  %v2478_v6 = vmul.f32 %v2376_v41, %v2239_v24  ;;  %v1584_v7 = vrot.slane %v4668_v46, %v3341_v2  ;;  %v1018_v53 = vsel %vm1012_vm5, %v999_v19, %v4930_v14  ;;  %v2921_v58 = vld [vmem:[#allocation2 + $0x100] sm:$0xff]  ;;  %v1799_v27 = vpop.permute.xlu0 %1798 }
 0x19d   :  { %v2194_v25 = vadd.f32 %v2155_v42, %v1398_v50  ;;  %v2756_v55 = vadd.f32 %v2717_v13, %v2516_v21  ;;  %v1122_v49 = vmul.f32 %v1083_v40, %v1083_v40  ;;  %v1444_v15 = vmax.f32 %v1083_v40, 0.0 }
 0x19e   :  { %v2718_v31 = vsel %vm3233_vm2, %v2679_v22, 0.0  ;;  %v2517_v30 = vadd.f32 %v2478_v6, %v1721_v11  ;;  %v4944_v26 = vcvt.s32.f32 %v193_v38  ;;  %v1084_v41 = vsub.f32 %v2921_v58, %v1018_v53  ;;  %v4989_v6 = vld [vmem:[#allocation2 + $0x108] sm:$0xff] }
 0x19f   :  { %v2793_v46 = vadd.f32 %v4870_v10, %v4874_v23  ;;  %v2843_v63 = vadd.f32 %v4872_v8, %v4883_v44  ;;  %v2195_v19 = vadd.f32 %v2156_v9, %v1399_v39  ;;  %v178_v50 = vand.u32 3, %v4921_v61 }
 0x1a0   :  { %v643_v35 = vmul.f32 %v544_v16, %v404_v34  ;;  %v1361_v51 = vmul.f32 %v1262_v36, %v1122_v49  ;;  %v1683_v33 = vmul.f32 %v1584_v7, %v1444_v15  ;;  %v4955_v11 = vmin.f32 %v4944_v26, 1.0 }
 0x1a1   :  { %v2794_v42 = vadd.f32 %v2793_v46, %v2194_v25  ;;  %v2757_v52 = vadd.f32 %v2718_v31, %v2517_v30  ;;  %v1266_v10 = vrot.slane %v4944_v26, %v3152_v56  ;;  %v1123_v23 = vmul.f32 %v1084_v41, %v1084_v41 }
 0x1a2   :  { %v926_v8 = vmul.f32 %v827_v28, %v687_v37  ;;  %v2844_v44 = vadd.f32 %v2843_v63, %v2756_v55  ;;  %v4964_v20 = vcvt.s32.f32 %v178_v50  ;;  %v300_v16 = vsel %vm294_vm4, %v4867_v57, %v281_v18  ;;  %v4997_v55 = vpop.permute.xlu1 %1800 }
 0x1a3   :  { %v4969_v34 = vadd.f32 %v2794_v42, %v2195_v19  ;;  %v1588_v39 = vrot.slane %v4955_v11, %v3152_v56  ;;  %v1445_v43 = vmax.f32 %v1084_v41, 0.0  ;;  %v366_v48 = vsub.f32 %v2921_v58, %v300_v16 }
 0x1a4   :  { %v1400_v13 = vadd.f32 %v1361_v51, %v643_v35  ;;  %v1722_v12 = vadd.f32 %v1683_v33, %v926_v8  ;;  %v4974_v54 = vmin.f32 %v4964_v20, 1.0  ;;  %v299_v28 = vsel %vm294_vm4, %v281_v18, %v4959_v62  ;;  %v1003_v35 = vpop.permute.xlu0 %1002 }
 0x1a5   :  { %v4979_v37 = vadd.f32 %v2844_v44, %v2757_v52  ;;  %v1362_v57 = vmul.f32 %v1266_v10, %v1123_v23  ;;  %v548_v24 = vrot.slane %v4964_v20, %v3152_v56  ;;  %v405_v36 = vmul.f32 %v366_v48, %v366_v48 }
 0x1a6   :  { %v831_v21 = vrot.slane %v4974_v54, %v3152_v56  ;;  %v688_v22 = vmax.f32 %v366_v48, 0.0  ;;  %v2557_v40 = vrot.slane %v4892_v3, 1  ;;  %v1813_v38 = vsel %vm1808_vm6, %v4905_v59, %v1799_v27  ;;  %v5018_v16 = vpop.permute.xlu1 %1004 }
 0x1a7   :  { %v1684_v9 = vmul.f32 %v1588_v39, %v1445_v43  ;;  %v4992_v7 = vsub.f32 %v4989_v6, %v299_v28  ;;  %v2058_v53 = vrot.slane %v4709_v45, %v3341_v2  ;;  %v1879_v25 = vsub.f32 %v4892_v3, %v1813_v38 }
 0x1a8   :  { %v2380_v49 = vrot.slane %v4716_v29, %v3341_v2  ;;  %v2596_v15 = vsub.f32 %v4892_v3, %v2557_v40  ;;  %v203_v59 = vshra.s32 %v4921_v61, 4  ;;  %v2558_v18 = vrot.slane %v2921_v58, 1 }
 0x1a9   :  { %v644_v31 = vmul.f32 %v548_v24, %v405_v36  ;;  %v552_v30 = vrot.slane %v4964_v20, %v3160_v60  ;;  %v835_v41 = vrot.slane %v4974_v54, %v3160_v60  ;;  %v1918_v45 = vmul.f32 %v1879_v25, %v1879_v25 }
 0x1aa   :  { %v927_v46 = vmul.f32 %v831_v21, %v688_v22  ;;  %v2635_v63 = vmax.f32 %v2596_v15, 0.0  ;;  %v2240_v19 = vmax.f32 %v1879_v25, 0.0  ;;  %v208_v50 = vand.u32 3, %v203_v59  ;;  %v285_v22 = vpop.permute.xlu0 %284 }
 0x1ab   :  { %v406_v2 = vmul.f32 %v4992_v7, %v4992_v7  ;;  %v689_v29 = vmax.f32 %v4992_v7, 0.0  ;;  %v2597_v3 = vsub.f32 %v2921_v58, %v2558_v18  ;;  %v1812_v61 = vsel %vm1808_vm6, %v1799_v27, %v4997_v55  ;;  %v2923_v18 = vld [vmem:[#allocation2 + $0x110] sm:$0xff] }
 0x1ac   :  { %v2680_v51 = vmul.f32 1.882353, %v2635_v63  ;;  %v2479_v33 = vmul.f32 %v2380_v49, %v2240_v19  ;;  %v5013_v42 = vcvt.s32.f32 %v208_v50  ;;  %v1880_v52 = vsub.f32 %v2921_v58, %v1812_v61 }
 0x1ad   :  { %v1401_v10 = vadd.f32 %v1362_v57, %v644_v31  ;;  %v2157_v23 = vmul.f32 %v2058_v53, %v1918_v45  ;;  %v2636_v8 = vmax.f32 %v2597_v3, 0.0  ;;  %v1017_v44 = vsel %vm1012_vm5, %v4930_v14, %v1003_v35  ;;  %v5045_v45 = vpop.permute.xlu1 %286 }
 0x1ae   :  { %v1723_v39 = vadd.f32 %v1684_v9, %v927_v46  ;;  %v2719_v43 = vsel %vm3233_vm2, %v2680_v51, 0.0  ;;  %v2518_v48 = vadd.f32 %v2479_v33, %v1722_v12  ;;  %v5023_v27 = vmin.f32 %v5013_v42, 1.0 }
 0x1af   :  { %v2062_v58 = vrot.slane %v5013_v42, %v3152_v56  ;;  %v2681_v28 = vmul.f32 1.882353, %v2636_v8  ;;  %v1919_v57 = vmul.f32 %v1880_v52, %v1880_v52  ;;  %v2241_v24 = vmax.f32 %v1880_v52, 0.0 }
 0x1b0   :  { %v2384_v36 = vrot.slane %v5023_v27, %v3152_v56  ;;  %v1270_v14 = vrot.slane %v4944_v26, %v3160_v60  ;;  %v1592_v21 = vrot.slane %v4955_v11, %v3160_v60  ;;  %v1085_v12 = vsub.f32 %v4989_v6, %v1017_v44  ;;  %v1803_v44 = vpop.permute.xlu0 %1802 }
 0x1b1   :  { %v2196_v40 = vadd.f32 %v2157_v23, %v1400_v13  ;;  %v2758_v38 = vadd.f32 %v2719_v43, %v2518_v48  ;;  %v1274_v9 = vrot.slane %v4944_v26, %v3180_v4  ;;  %v1016_v7 = vsel %vm1012_vm5, %v1003_v35, %v5018_v16 }
 0x1b2   :  { %v2720_v56 = vsel %vm3233_vm2, %v2681_v28, 0.0  ;;  %v2480_v53 = vmul.f32 %v2384_v36, %v2241_v24  ;;  %v1124_v25 = vmul.f32 %v1085_v12, %v1085_v12  ;;  %v1446_v49 = vmax.f32 %v1085_v12, 0.0 }
 0x1b3   :  { %v2158_v15 = vmul.f32 %v2062_v58, %v1919_v57  ;;  %v1596_v59 = vrot.slane %v4955_v11, %v3180_v4  ;;  %v1086_v13 = vsub.f32 %v2923_v18, %v1016_v7  ;;  %v556_v31 = vrot.slane %v4964_v20, %v3180_v4 }
 0x1b4   :  { %v2519_v46 = vadd.f32 %v2480_v53, %v1723_v39  ;;  %v1363_v63 = vmul.f32 %v1270_v14, %v1124_v25  ;;  %v1685_v19 = vmul.f32 %v1592_v21, %v1446_v49  ;;  %v298_v50 = vsel %vm294_vm4, %v4959_v62, %v285_v22  ;;  %v1007_v53 = vpop.permute.xlu0 %1006 }
 0x1b5   :  { %v1125_v35 = vmul.f32 %v1086_v13, %v1086_v13  ;;  %v1447_v3 = vmax.f32 %v1086_v13, 0.0  ;;  %v839_v61 = vrot.slane %v4974_v54, %v3180_v4  ;;  %v368_v51 = vsub.f32 %v2923_v18, %v298_v50 }
 0x1b6   :  { %v645_v33 = vmul.f32 %v552_v30, %v406_v2  ;;  %v928_v52 = vmul.f32 %v835_v41, %v689_v29  ;;  %v2796_v23 = vadd.f32 %v4969_v34, %v2196_v40  ;;  %v2846_v8 = vadd.f32 %v4979_v37, %v2758_v38  ;;  %v5057_v41 = vld [vmem:[#allocation2 + $0x118] sm:$0xff]  ;;  %v5060_v37 = vpop.permute.xlu1 %1804 }
 0x1b7   :  { %v2197_v39 = vadd.f32 %v2158_v15, %v1401_v10  ;;  %v2759_v43 = vadd.f32 %v2720_v56, %v2519_v46  ;;  %v407_v48 = vmul.f32 %v368_v51, %v368_v51  ;;  %v690_v58 = vmax.f32 %v368_v51, 0.0 }
 0x1b8   :  { %v1402_v28 = vadd.f32 %v1363_v63, %v645_v33  ;;  %v1724_v57 = vadd.f32 %v1685_v19, %v928_v52  ;;  %v1364_v62 = vmul.f32 %v1274_v9, %v1125_v35  ;;  %v297_v24 = vsel %vm294_vm4, %v285_v22, %v5045_v45 }
 0x1b9   :  { %v1686_v36 = vmul.f32 %v1596_v59, %v1447_v3  ;;  %v646_v14 = vmul.f32 %v556_v31, %v407_v48  ;;  %v929_v30 = vmul.f32 %v839_v61, %v690_v58  ;;  %v369_v34 = vsub.f32 %v5057_v41, %v297_v24 }
 0x1ba   :  { %v560_v2 = vrot.slane %v4964_v20, %v3213_v17  ;;  %v843_v29 = vrot.slane %v4974_v54, %v3213_v17  ;;  %v2559_v10 = vrot.slane %v4989_v6, 1  ;;  %v1811_v21 = vsel %vm1808_vm6, %v4997_v55, %v1803_v44  ;;  %v5086_v51 = vpop.permute.xlu1 %1008 }
 0x1bb   :  { %v2066_v12 = vrot.slane %v5013_v42, %v3160_v60  ;;  %v2388_v22 = vrot.slane %v5023_v27, %v3160_v60  ;;  %v2070_v40 = vrot.slane %v5013_v42, %v3180_v4  ;;  %v2392_v38 = vrot.slane %v5023_v27, %v3180_v4 }
 0x1bc   :  { %v2598_v9 = vsub.f32 %v4989_v6, %v2559_v10  ;;  %v1881_v7 = vsub.f32 %v4989_v6, %v1811_v21  ;;  %v2560_v56 = vrot.slane %v2923_v18, 1  ;;  %v1810_v55 = vsel %vm1808_vm6, %v1803_v44, %v5060_v37 }
 0x1bd   :  { %v1403_v25 = vadd.f32 %v1364_v62, %v646_v14  ;;  %v1725_v49 = vadd.f32 %v1686_v36, %v929_v30  ;;  %v408_v15 = vmul.f32 %v369_v34, %v369_v34  ;;  %v1882_v60 = vsub.f32 %v2923_v18, %v1810_v55  ;;  %v5102_v55 = vld [vmem:[#allocation2 + $0x120] sm:$0xff] }
 0x1be   :  { %v2637_v59 = vmax.f32 %v2598_v9, 0.0  ;;  %v1920_v13 = vmul.f32 %v1881_v7, %v1881_v7  ;;  %v2242_v31 = vmax.f32 %v1881_v7, 0.0  ;;  %v2599_v46 = vsub.f32 %v2923_v18, %v2560_v56 }
 0x1bf   :  { %v691_v63 = vmax.f32 %v369_v34, 0.0  ;;  %v1921_v4 = vmul.f32 %v1882_v60, %v1882_v60  ;;  %v2243_v19 = vmax.f32 %v1882_v60, 0.0  ;;  %v1015_v6 = vsel %vm1012_vm5, %v5018_v16, %v1007_v53 }
 0x1c0   :  { %v2682_v50 = vmul.f32 1.882353, %v2637_v59  ;;  %v2159_v35 = vmul.f32 %v2066_v12, %v1920_v13  ;;  %v2481_v3 = vmul.f32 %v2388_v22, %v2242_v31  ;;  %v2638_v61 = vmax.f32 %v2599_v46, 0.0  ;;  %v289_v22 = vpop.permute.xlu0 %288 }
 0x1c1   :  { %v2160_v33 = vmul.f32 %v2070_v40, %v1921_v4  ;;  %v2482_v52 = vmul.f32 %v2392_v38, %v2243_v19  ;;  %v1278_v44 = vrot.slane %v4944_v26, %v3213_v17  ;;  %v1087_v18 = vsub.f32 %v5057_v41, %v1015_v6 }
 0x1c2   :  { %v2721_v48 = vsel %vm3233_vm2, %v2682_v50, 0.0  ;;  %v2520_v58 = vadd.f32 %v2481_v3, %v1724_v57  ;;  %v2683_v62 = vmul.f32 1.882353, %v2638_v61  ;;  %v1600_v16 = vrot.slane %v4955_v11, %v3213_v17  ;;  %v5130_v61 = vld [vmem:[#allocation2 + $0x128] sm:$0xff] }
 0x1c3   :  { %v2198_v24 = vadd.f32 %v2159_v35, %v1402_v28  ;;  %v2521_v36 = vadd.f32 %v2482_v52, %v1725_v49  ;;  %v1126_v14 = vmul.f32 %v1087_v18, %v1087_v18  ;;  %v1448_v30 = vmax.f32 %v1087_v18, 0.0  ;;  %v5437_v35 = vld [vmem:[#allocation23_spill] sm:$0xff]  ;;  %v5133_v18 = vld [vmem:[#allocation2 + $0x130] sm:$0xff] }
 0x1c4   :  { %v2797_v34 = vadd.f32 %v2796_v23, %v2197_v39  ;;  %v2847_v10 = vadd.f32 %v2846_v8, %v2759_v43  ;;  %v2760_v21 = vadd.f32 %v2721_v48, %v2520_v58  ;;  %v2722_v12 = vsel %vm3233_vm2, %v2683_v62, 0.0  ;;  %v291_v8 = vpop.permute.xlu1 %290  ;;  %v1807_v19 = vpop.permute.xlu0 %1806 }
 0x1c5   :  { %v647_v40 = vmul.f32 %v560_v2, %v408_v15  ;;  %v2199_v38 = vadd.f32 %v2160_v33, %v1403_v25  ;;  %v1365_v9 = vmul.f32 %v1278_v44, %v1126_v14  ;;  %v1014_v57 = vsel %vm1012_vm5, %v1007_v53, %v5086_v51 }
 0x1c6   :  { %v930_v7 = vmul.f32 %v843_v29, %v691_v63  ;;  %v1687_v56 = vmul.f32 %v1600_v16, %v1448_v30  ;;  %v1282_v28 = vrot.slane %v4944_v26, %v3258_v47  ;;  %v1088_v23 = vsub.f32 %v5102_v55, %v1014_v57 }
 0x1c7   :  { %v2798_v39 = vadd.f32 %v2797_v34, %v2198_v24  ;;  %v5105_v43 = vadd.f32 %v2722_v12, %v2521_v36  ;;  %v1604_v2 = vrot.slane %v4955_v11, %v3258_v47  ;;  %v296_v53 = vsel %vm294_vm4, %v5045_v45, %v289_v22 }
 0x1c8   :  { %v5112_v29 = vadd.f32 %v2847_v10, %v2760_v21  ;;  %v1127_v25 = vmul.f32 %v1088_v23, %v1088_v23  ;;  %v564_v49 = vrot.slane %v4964_v20, %v3258_v47  ;;  %v370_v15 = vsub.f32 %v5102_v55, %v296_v53  ;;  %v1731_v36 = vpop.permute.xlu1 %1730  ;;  %v1011_v57 = vpop.permute.xlu0 %1010 }
 0x1c9   :  { %v5117_v60 = vadd.f32 %v2798_v39, %v2199_v38  ;;  %v1404_v59 = vadd.f32 %v1365_v9, %v647_v40  ;;  %v1449_v13 = vmax.f32 %v1088_v23, 0.0  ;;  %v295_v31 = vsel %vm294_vm4, %v289_v22, %v291_v8 }
 0x1ca   :  { %v1726_v46 = vadd.f32 %v1687_v56, %v930_v7  ;;  %v847_v63 = vrot.slane %v4974_v54, %v3258_v47  ;;  %v409_v45 = vmul.f32 %v370_v15, %v370_v15  ;;  %v692_v4 = vmax.f32 %v370_v15, 0.0 }
 0x1cb   :  { %v568_v6 = vrot.slane %v4964_v20, %v3278_v0  ;;  %v572_v50 = vrot.slane %v4964_v20, %v3328_v5  ;;  %v333_v3 = vsel %vm294_vm4, %v291_v8, %v5437_v35  ;;  %v371_v33 = vsub.f32 %v5130_v61, %v295_v31 }
 0x1cc   :  { %v1366_v52 = vmul.f32 %v1282_v28, %v1127_v25  ;;  %v648_v44 = vmul.f32 %v564_v49, %v409_v45  ;;  %v372_v48 = vsub.f32 %v5133_v18, %v333_v3  ;;  %v2561_v58 = vrot.slane %v5057_v41, 1 }
 0x1cd   :  { %v1688_v62 = vmul.f32 %v1604_v2, %v1449_v13  ;;  %v851_v20 = vrot.slane %v4974_v54, %v3278_v0  ;;  %v855_v16 = vrot.slane %v4974_v54, %v3328_v5  ;;  %v1809_v24 = vsel %vm1808_vm6, %v5060_v37, %v1807_v19 }
 0x1ce   :  { %v931_v14 = vmul.f32 %v847_v63, %v692_v4  ;;  %v410_v30 = vmul.f32 %v371_v33, %v371_v33  ;;  %v411_v34 = vmul.f32 %v372_v48, %v372_v48  ;;  %v693_v10 = vmax.f32 %v371_v33, 0.0  ;;  %v5438_v63 = vld [vmem:[#allocation26_spill] sm:$0xff]  ;;  %v1733_v33 = vpop.permute.xlu0 %1732 }
 0x1cf   :  { %v2074_v21 = vrot.slane %v5013_v42, %v3213_v17  ;;  %v2396_v12 = vrot.slane %v5023_v27, %v3213_v17  ;;  %v2600_v22 = vsub.f32 %v5057_v41, %v2561_v58  ;;  %v1883_v40 = vsub.f32 %v5057_v41, %v1809_v24 }
 0x1d0   :  { %v1405_v54 = vadd.f32 %v1366_v52, %v648_v44  ;;  %v694_v38 = vmax.f32 %v372_v48, 0.0  ;;  %v2078_v37 = vrot.slane %v5013_v42, %v3258_v47  ;;  %v1847_v9 = vsel %vm1808_vm6, %v1807_v19, %v1731_v36 }
 0x1d1   :  { %v2639_v7 = vmax.f32 %v2600_v22, 0.0  ;;  %v1922_v56 = vmul.f32 %v1883_v40, %v1883_v40  ;;  %v2244_v28 = vmax.f32 %v1883_v40, 0.0  ;;  %v1884_v23 = vsub.f32 %v5102_v55, %v1847_v9 }
 0x1d2   :  { %v1727_v8 = vadd.f32 %v1688_v62, %v931_v14  ;;  %v649_v17 = vmul.f32 %v568_v6, %v410_v30  ;;  %v650_v39 = vmul.f32 %v572_v50, %v411_v34  ;;  %v932_v2 = vmul.f32 %v851_v20, %v693_v10  ;;  %v5439_v14 = vld [vmem:[#allocation28_spill] sm:$0xff] }
 0x1d3   :  { %v2684_v53 = vmul.f32 1.882353, %v2639_v7  ;;  %v2161_v41 = vmul.f32 %v2074_v21, %v1922_v56  ;;  %v2483_v25 = vmul.f32 %v2396_v12, %v2244_v28  ;;  %v1923_v49 = vmul.f32 %v1884_v23, %v1884_v23 }
 0x1d4   :  { %v2400_v15 = vrot.slane %v5023_v27, %v3258_v47  ;;  %v2245_v13 = vmax.f32 %v1884_v23, 0.0  ;;  %v1013_v31 = vsel %vm1012_vm5, %v5086_v51, %v1011_v57  ;;  %v1051_v45 = vsel %vm1012_vm5, %v1011_v57, %v5438_v63 }
 0x1d5   :  { %v933_v4 = vmul.f32 %v855_v16, %v694_v38  ;;  %v1286_v19 = vrot.slane %v4944_v26, %v3278_v0  ;;  %v1290_v6 = vrot.slane %v4944_v26, %v3328_v5  ;;  %v1608_v50 = vrot.slane %v4955_v11, %v3278_v0 }
 0x1d6   :  { %v2522_v47 = vadd.f32 %v2483_v25, %v1726_v46  ;;  %v2162_v35 = vmul.f32 %v2078_v37, %v1923_v49  ;;  %v1089_v3 = vsub.f32 %v5130_v61, %v1013_v31  ;;  %v1090_v51 = vsub.f32 %v5133_v18, %v1051_v45 }
 0x1d7   :  { %v2723_v52 = vsel %vm3233_vm2, %v2684_v53, 0.0  ;;  %v2200_v44 = vadd.f32 %v2161_v41, %v1404_v59  ;;  %v1612_v48 = vrot.slane %v4955_v11, %v3328_v5  ;;  %v2082_v26 = vrot.slane %v5013_v42, %v3278_v0 }
 0x1d8   :  { %v2484_v58 = vmul.f32 %v2400_v15, %v2245_v13  ;;  %v1128_v62 = vmul.f32 %v1089_v3, %v1089_v3  ;;  %v1129_v20 = vmul.f32 %v1090_v51, %v1090_v51  ;;  %v2086_v46 = vrot.slane %v5013_v42, %v3328_v5 }
 0x1d9   :  { %v1450_v16 = vmax.f32 %v1089_v3, 0.0  ;;  %v1451_v24 = vmax.f32 %v1090_v51, 0.0  ;;  %v1845_v30 = vsel %vm1808_vm6, %v1733_v33, %v5439_v14  ;;  %v1846_v59 = vsel %vm1808_vm6, %v1731_v36, %v1733_v33 }
 0x1da   :  { %v2762_v34 = vadd.f32 %v2723_v52, %v2522_v47  ;;  %v2201_v11 = vadd.f32 %v2162_v35, %v1405_v54  ;;  %v1367_v10 = vmul.f32 %v1286_v19, %v1128_v62  ;;  %v1885_v21 = vsub.f32 %v5130_v61, %v1846_v59 }
 0x1db   :  { %v2404_v12 = vrot.slane %v5023_v27, %v3278_v0  ;;  %v2408_v42 = vrot.slane %v5023_v27, %v3328_v5  ;;  %v1886_v22 = vsub.f32 %v5133_v18, %v1845_v30  ;;  %v2562_v40 = vrot.slane %v5102_v55, 1 }
 0x1dc   :  { %v1368_v38 = vmul.f32 %v1290_v6, %v1129_v20  ;;  %v1924_v37 = vmul.f32 %v1885_v21, %v1885_v21  ;;  %v2246_v9 = vmax.f32 %v1885_v21, 0.0  ;;  %v2800_v1 = vadd.f32 %v5117_v60, %v2200_v44 }
 0x1dd   :  { %v1689_v36 = vmul.f32 %v1608_v50, %v1450_v16  ;;  %v1690_v54 = vmul.f32 %v1612_v48, %v1451_v24  ;;  %v1925_v57 = vmul.f32 %v1886_v22, %v1886_v22  ;;  %v2247_v7 = vmax.f32 %v1886_v22, 0.0 }
 0x1de   :  { %v1406_v56 = vadd.f32 %v1367_v10, %v649_v17  ;;  %v2163_v28 = vmul.f32 %v2082_v26, %v1924_v37  ;;  %v2563_v0 = vrot.slane %v5130_v61, 1  ;;  %v2564_v23 = vrot.slane %v5133_v18, 1 }
 0x1df   :  { %v2164_v5 = vmul.f32 %v2086_v46, %v1925_v57  ;;  %v2485_v27 = vmul.f32 %v2404_v12, %v2246_v9  ;;  %v2801_v53 = vadd.f32 %v2800_v1, %v2201_v11  ;;  %v2601_v41 = vsub.f32 %v5102_v55, %v2562_v40 }
 0x1e0   :  { %v1407_v25 = vadd.f32 %v1368_v38, %v650_v39  ;;  %v2202_v49 = vadd.f32 %v2163_v28, %v1406_v56  ;;  %v2602_v15 = vsub.f32 %v5130_v61, %v2563_v0  ;;  %v2603_v60 = vsub.f32 %v5133_v18, %v2564_v23 }
 0x1e1   :  { %v2523_v13 = vadd.f32 %v2484_v58, %v1727_v8  ;;  %v1728_v31 = vadd.f32 %v1689_v36, %v932_v2  ;;  %v2486_v63 = vmul.f32 %v2408_v42, %v2247_v7  ;;  %v2640_v17 = vmax.f32 %v2601_v41, 0.0 }
 0x1e2   :  { %v2203_v45 = vadd.f32 %v2164_v5, %v1407_v25  ;;  %v2802_v19 = vadd.f32 %v2801_v53, %v2202_v49  ;;  %v2641_v6 = vmax.f32 %v2602_v15, 0.0  ;;  %v2642_v50 = vmax.f32 %v2603_v60, 0.0 }
 0x1e3   :  { %v1729_v47 = vadd.f32 %v1690_v54, %v933_v4  ;;  %v2524_v35 = vadd.f32 %v2485_v27, %v1728_v31  ;;  %v2685_v3 = vmul.f32 1.882353, %v2640_v17  ;;  %v2849_v39 = vadd.f32 %v5112_v29, %v5105_v43 }
 0x1e4   :  { %v2803_v51 = vadd.f32 %v2802_v19, %v2203_v45  ;;  %v2686_v33 = vmul.f32 1.882353, %v2641_v6  ;;  %v2687_v55 = vmul.f32 1.882353, %v2642_v50 }
 0x1e5   :  { %v2724_v61 = vsel %vm3233_vm2, %v2685_v3, 0.0  ;;  %v2525_v18 = vadd.f32 %v2486_v63, %v1729_v47  ;;  %v2850_v52 = vadd.f32 %v2849_v39, %v2762_v34 }
 0x1e6   :  { %2804 = vadd.xlane.f32.xlu1 %v2803_v51  ;;  %v2725_v8 = vsel %vm3233_vm2, %v2686_v33, 0.0  ;;  %v2763_v2 = vadd.f32 %v2724_v61, %v2523_v13  ;;  %v2726_v4 = vsel %vm3233_vm2, %v2687_v55, 0.0 }
 0x1e7   :  { %v2764_v44 = vadd.f32 %v2725_v8, %v2524_v35  ;;  %v2765_v26 = vadd.f32 %v2726_v4, %v2525_v18 }
 0x1e8   :  { %v2851_v48 = vadd.f32 %v2850_v52, %v2763_v2 }
 0x1ea   :  { %v2852_v58 = vadd.f32 %v2851_v48, %v2764_v44 }
 0x1ec   :  { %v2853_v62 = vadd.f32 %v2852_v58, %v2765_v26 }
 0x1ee   :  { %2854 = vadd.xlane.f32.xlu0 %v2853_v62 }
 0x273   :  { %v2805_v43 = vpop.xlane.xlu1 %2804 }
 0x274   :  { %v2806_v29 = vrot.slane %v2805_v43, 4 }
 0x276   :  { %v2807_v20 = vadd.f32 %v2806_v29, %v2805_v43 }
 0x278   :  { %v2808_v46 = vrot.slane %v2807_v20, 2 }
 0x27a   :  { %v2809_v16 = vadd.f32 %v2808_v46, %v2807_v20 }
 0x27b   :  { %v2855_v24 = vpop.xlane.xlu0 %2854 }
 0x27c   :  { %v2856_v14 = vrot.slane %v2855_v24, 4  ;;  %v2810_v30 = vrot.slane %v2809_v16, 1 }
 0x27e   :  { %v2857_v59 = vadd.f32 %v2856_v14, %v2855_v24  ;;  %v2811_v11 = vadd.f32 %v2810_v30, %v2809_v16 }
 0x280   :  { %v2858_v34 = vrot.slane %v2857_v59, 2  ;;  %2881 = vpush %v2811_v11 }
 0x282   :  { %v2859_v32 = vadd.f32 %v2858_v34, %v2857_v59 }
 0x284   :  { %v2860_v10 = vrot.slane %v2859_v32, 1 }
 0x286   :  { %v2861_v21 = vadd.f32 %v2860_v10, %v2859_v32 }
 0x288   :  { %2883 = vpush %v2861_v21 }
 0x2b1   :  { %s2882_s1 = spop %2881 }
 0x2b2   :  { %s2813_s15 = smul.f32 3.6043828e-05, %s2882_s1 }
 0x2b4   :  { %2815 = sst [smem:[#allocation3]] %s2813_s15 }
 0x2b9   :  { %s2884_s19 = spop %2883 }
 0x2ba   :  { %s2863_s20 = smul.f32 3.6043828e-05, %s2884_s19 }
 0x2bc   :  { %2865 = sst [smem:[#allocation3 + $0x1]] %s2863_s20 }
 0x2bd   :  { %2939 = shalt.err (!%p2936_p4)
}
 0x2be   :  { %s2946_s22 = smov [#allocation3]  }
 0x2bf   :  { %2875 = dma.smem_to_vmem %s2946_s22, 16, %s2873_s18, [#allocation4]  }
 0x2c0   :  { %2940 = dma.done.wait [#allocation4], 16  }
 0x2c1   :  { %2941 = vsyncadd [#allocation4], 4294967280 }
 0x2c2   :  { %2879 = sfence }
 0x2c3   :  { %2880 = vsyncpa [#allocation4], 1 }

</bundles_post_ra>
